<compile_context>
chip_gen: v5e
topology: v5e:2x2
jax: 0.10.0
libtpu: 0.0.40
codegen_flags: <defaults>
</compile_context>

<pallas_src>
import functools

import jax
import jax.numpy as jnp
from jax.experimental import pallas as pl
from jax.experimental.pallas import tpu as pltpu


# ----------------------------- Pallas kernel --------------------------------
def _make_kernel(B, H, L):
    """B batch images per grid step, H rows, L = W * CMAX lane-dense width."""
    M = B * H

    def kernel(x_ref, w_ref, b_ref, o_ref, pad_ref):
        # Zero ONLY the two halo rows of the padded scratch, once per grid
        # step.  The interior is fully rewritten before every conv; the halo
        # must stay zero for all 8 convs.  Deliberately NOT hoisted under
        # program_id(0) == 0 (unsafe when the parallel grid axis is split
        # across TensorCores on v7x).
        zero_row = jnp.zeros((B, 1, L), jnp.bfloat16)
        pad_ref[:, 0:1, :] = zero_row
        pad_ref[:, H + 1:H + 2, :] = zero_row

        def conv(layer, act):
            # act: (M, L) value (f32 or bf16).  Stage bf16 once into the
            # padded scratch, then one lane-dense (M, L) x (L, L) MXU matmul
            # per kh tap against the block-banded weights (kw taps + width
            # zero-padding are folded into the band).  Bias is pre-tiled
            # across W (zeros for the bias-free stem / output convs).
            pad_ref[:, 1:H + 1, :] = act.reshape(B, H, L).astype(jnp.bfloat16)
            acc = None
            for kh in range(3):
                xk = pad_ref[:, kh:kh + H, :].reshape(M, L)           # bf16
                d = jnp.dot(xk, w_ref[layer, kh, :, :],
                            preferred_element_type=jnp.float32)       # (M, L) f32
                acc = d if acc is None else acc + d
            return acc + b_ref[layer:layer + 1, :]                    # f32

        h = jnp.maximum(conv(0, x_ref[...]), 0.0)                     # stem conv
        layer = 1
        for _ in range(3):                                            # 3 residual blocks
            y = jnp.maximum(conv(layer, h), 0.0); layer += 1
            y = conv(layer, y); layer += 1
            h = jnp.maximum(h + y, 0.0)
        o_ref[...] = jnp.maximum(conv(7, h), 0.0)                     # output conv (lane-dense)

    return kernel


# ------------------------------- weight packing -------------------------------
_CONV_ORDER = (("w0", None), ("w1a", "b1a"), ("w1b", "b1b"),
               ("w2a", "b2a"), ("w2b", "b2b"),
               ("w3a", "b3a"), ("w3b", "b3b"), ("wo", None))


def _pack_params(params, CMAX, W):
    """Pack all 8 convs into lane-dense block-banded slabs.

    Weights: (8, 3, L, L) bf16 where slab[l, kh] is the block-banded matrix
    whose (w_in, w_out) CMAXxCMAX block equals the (kh, kw) tap with
    kw = w_in - w_out + 1 (zero outside the band => width zero-padding).
    Bias:    (8, L) f32, per-channel bias tiled across W (zero if absent).
    """
    L = W * CMAX
    w_layers, b_layers = [], []
    for wk, bk in _CONV_ORDER:
        w9 = params[wk].astype(jnp.float32)                       # (9, cin, cout)
        cin, cout = w9.shape[1], w9.shape[2]
        wpad = jnp.zeros((3, 3, CMAX, CMAX), jnp.float32)
        wpad = wpad.at[:, :, :cin, :cout].set(w9.reshape(3, 3, cin, cout))
        bands = []
        for kh in range(3):
            band = jnp.zeros((L, L), jnp.float32)
            for kw in range(3):
                band = band + jnp.kron(
                    jnp.eye(W, k=1 - kw, dtype=jnp.float32), wpad[kh, kw])
            bands.append(band)
        w_layers.append(jnp.stack(bands))                          # (3, L, L)
        if bk is None:
            b_layers.append(jnp.zeros((L,), jnp.float32))
        else:
            b = params[bk].reshape(-1)
            bpad = jnp.zeros((CMAX,), jnp.float32).at[:b.shape[0]].set(b)
            b_layers.append(jnp.tile(bpad, W))                     # (L,)
    w_all = jnp.stack(w_layers).astype(jnp.bfloat16)               # (8, 3, L, L)
    b_all = jnp.stack(b_layers)                                    # (8, L) f32
    return w_all, b_all


# ------------------------------- wrapper -------------------------------------
def dynamics_forward(hidden_state, action, params, *, batch_block=128):
    """hidden_state: (N, G, H, W) NCHW, action: (N, 2, H, W) NCHW -> (N, G, H, W)."""
    N, G, H, W = hidden_state.shape
    Cin0 = G + 2
    C = params["w1a"].shape[-1]
    CMAX = max(Cin0, C)
    L = W * CMAX           # lane axis; = 128 for the 8x8 board / 16-channel case

    # NCHW -> lane-dense (N*H, W*CMAX) bf16; channels zero-padded to CMAX so all
    # convs share one lane-dense width.  Padded channels stay inert because the
    # matching banded-weight rows/columns are zero.  Cast to bf16 once here.
    x = jnp.concatenate([hidden_state, action], axis=1)            # (N, Cin0, H, W)
    x = jnp.transpose(x, (0, 2, 3, 1)).astype(jnp.float32)         # (N, H, W, Cin0)
    x = jnp.pad(x, ((0, 0), (0, 0), (0, 0), (0, CMAX - Cin0)))

    # TODO(synk): on v7x cap B at N // 2 so n_blocks >= 2 and the "parallel"
    #             batch axis shards across both TensorCores.
    B = min(N, batch_block)
    n_blocks = pl.cdiv(N, B)
    Npad = n_blocks * B
    if Npad != N:
        x = jnp.pad(x, ((0, Npad - N), (0, 0), (0, 0), (0, 0)))
    x = x.reshape(Npad * H, L).astype(jnp.bfloat16)

    w_all, b_all = _pack_params(params, CMAX, W)    # (8,3,L,L) bf16, (8,L) f32
    kernel = _make_kernel(B, H, L)

    out = pl.pallas_call(
        kernel,
        out_shape=jax.ShapeDtypeStruct((Npad * H, L), jnp.float32),
        grid=(n_blocks,),
        in_specs=[
            pl.BlockSpec((B * H, L), lambda n: (n, 0)),
            pl.BlockSpec(w_all.shape, lambda n: (0, 0, 0, 0)),
            pl.BlockSpec(b_all.shape, lambda n: (0, 0)),
        ],
        out_specs=pl.BlockSpec((B * H, L), lambda n: (n, 0)),
        scratch_shapes=[
            pltpu.VMEM((B, H + 2, L), jnp.bfloat16),   # padded activations (bf16)
        ],
        compiler_params=pltpu.CompilerParams(
            dimension_semantics=("parallel",)),
    )(x, w_all, b_all)

    out = out.reshape(Npad, H, W, CMAX)[:N, :, :, :G]   # lane-dense slab -> NHWC
    return jnp.transpose(out, (0, 3, 1, 2))             # back to NCHW


# ------------------------ synthetic parameter init ---------------------------
def init_params(key, board_gridsize, channels):
    """Deterministic synthetic weights (PyTorch conv layout -> kernel layout)."""
    G, C = board_gridsize, channels
    Cin0 = G + 2
    keys = jax.random.split(key, 20)

    def conv_w(k, cin, cout, scale=0.1):
        # PyTorch (cout, cin, 3, 3) -> (3, 3, cin, cout) -> (9, cin, cout)
        w = jax.random.normal(k, (cout, cin, 3, 3), jnp.float32) * scale
        return jnp.transpose(w, (2, 3, 1, 0)).reshape(9, cin, cout)

    def bias(k, cout, scale=0.05):
        return (jax.random.normal(k, (cout,), jnp.float32) * scale).reshape(1, cout)

    params = {"w0": conv_w(keys[0], Cin0, C)}
    ki = 1
    for b in (1, 2, 3):
        params[f"w{b}a"] = conv_w(keys[ki], C, C); ki += 1
        params[f"b{b}a"] = bias(keys[ki], C); ki += 1
        params[f"w{b}b"] = conv_w(keys[ki], C, C); ki += 1
        params[f"b{b}b"] = bias(keys[ki], C); ki += 1
    params["wo"] = conv_w(keys[ki], C, G)
    return params


# ---------------- pure-JAX references (for correctness check) ----------------
def _conv_ref(x_nchw, w9, bias=None, *, quantize=False):
    cin, cout = w9.shape[1], w9.shape[2]
    w = jnp.transpose(w9.reshape(3, 3, cin, cout), (3, 2, 0, 1))  # OIHW
    if quantize:                      # mirror kernel: bf16 operands, f32 accumulate
        x_nchw = x_nchw.astype(jnp.bfloat16)
        w = w.astype(jnp.bfloat16)
        prec = None
    else:
        prec = jax.lax.Precision.HIGHEST
    y = jax.lax.conv_general_dilated(
        x_nchw, w, window_strides=(1, 1), padding=((1, 1), (1, 1)),
        dimension_numbers=("NCHW", "OIHW", "NCHW"),
        preferred_element_type=jnp.float32, precision=prec)
    if bias is not None:
        y = y + bias.reshape(1, cout, 1, 1)
    return y


def reference_forward(hidden_state, action, params, *, quantize=False):
    conv = functools.partial(_conv_ref, quantize=quantize)
    x = jnp.concatenate([hidden_state, action], axis=1).astype(jnp.float32)
    h = jax.nn.relu(conv(x, params["w0"]))
    for b in (1, 2, 3):
        y = jax.nn.relu(conv(h, params[f"w{b}a"], params[f"b{b}a"]))
        y = conv(y, params[f"w{b}b"], params[f"b{b}b"])
        h = jax.nn.relu(h + y)
    return jax.nn.relu(conv(h, params["wo"]))


if __name__ == "__main__":
    board_gridsize = 8
    channels = 16
    N, H, W = 2, 8, 8

    key = jax.random.PRNGKey(0)
    k_hs, k_act, k_par = jax.random.split(key, 3)
    hidden_state = jax.random.normal(k_hs, (N, board_gridsize, H, W), jnp.float32)
    action = jax.random.normal(k_act, (N, 2, H, W), jnp.float32)
    params = init_params(k_par, board_gridsize, channels)

    out = dynamics_forward(hidden_state, action, params)
    out = jax.block_until_ready(out)
    assert out.shape == (N, board_gridsize, H, W), out.shape

    # Tight check vs. a reference with identical bf16-operand / f32-accumulate matmuls.
    ref_q = reference_forward(hidden_state, action, params, quantize=True)
    err_q = float(jnp.max(jnp.abs(out - ref_q)))
    # Loose sanity check vs. the full-f32 reference (bf16 MXU rounding only).
    ref_f = reference_forward(hidden_state, action, params, quantize=False)
    err_f = float(jnp.max(jnp.abs(out - ref_f)))
    if err_q > 2e-3:
        raise AssertionError(f"Pallas kernel mismatch vs bf16 reference: {err_q}")
    if err_f > 1e-1:
        raise AssertionError(f"Pallas kernel mismatch vs f32 reference: {err_f}")

    print("KERNEL_OK")
</pallas_src>

<mosaic_0001>
module attributes {stable_mosaic.version = 11 : i64} {
  func.func @kernel(%arg0: i32, %arg1: memref<16x128xbf16, #tpu.memory_space<vmem>>, %arg2: memref<8x3x128x128xbf16, #tpu.memory_space<vmem>>, %arg3: memref<8x128xf32, #tpu.memory_space<vmem>>, %arg4: memref<16x128xf32, #tpu.memory_space<vmem>>, %arg5: memref<2x10x128xbf16, #tpu.memory_space<vmem>>) attributes {dimension_semantics = [#tpu.dimension_semantics<parallel>], iteration_bounds = array<i64: 1>, scalar_prefetch = 0 : i64, scratch_operands = 1 : i64, tpu.core_type = #tpu.core_type<tc>, window_params = [{transform_indices = @transform_0, window_bounds = array<i64: 16, 128>}, {pipeline_mode = #tpu.pipeline_mode<synchronous>, transform_indices = @transform_1, window_bounds = array<i64: 8, 3, 128, 128>}, {pipeline_mode = #tpu.pipeline_mode<synchronous>, transform_indices = @transform_2, window_bounds = array<i64: 8, 128>}, {transform_indices = @transform_3, window_bounds = array<i64: 16, 128>}]} {
    %cst = arith.constant 0.000000e+00 : bf16
    %0 = vector.broadcast %cst : bf16 to vector<2x1x128xbf16>
    %c0 = arith.constant 0 : index
    %c0_0 = arith.constant 0 : index
    %c0_1 = arith.constant 0 : index
    %1 = vector.load %arg5[%c0, %c0_0, %c0_1] : memref<2x10x128xbf16, #tpu.memory_space<vmem>>, vector<2x1x128xbf16>
    tpu.vector_store %arg5[%c0, %c0_0, %c0_1], %0 {strides = array<i32>} : memref<2x10x128xbf16, #tpu.memory_space<vmem>>, vector<2x1x128xbf16>,
    %c0_2 = arith.constant 0 : index
    %c9 = arith.constant 9 : index
    %c0_3 = arith.constant 0 : index
    %2 = vector.load %arg5[%c0_2, %c9, %c0_3] : memref<2x10x128xbf16, #tpu.memory_space<vmem>>, vector<2x1x128xbf16>
    tpu.vector_store %arg5[%c0_2, %c9, %c0_3], %0 {strides = array<i32>} : memref<2x10x128xbf16, #tpu.memory_space<vmem>>, vector<2x1x128xbf16>,
    %c0_4 = arith.constant 0 : index
    %c0_5 = arith.constant 0 : index
    %3 = vector.load %arg1[%c0_4, %c0_5] : memref<16x128xbf16, #tpu.memory_space<vmem>>, vector<16x128xbf16>
    %4 = vector.shape_cast %3 : vector<16x128xbf16> to vector<2x8x128xbf16>
    %c0_6 = arith.constant 0 : index
    %c1 = arith.constant 1 : index
    %c0_7 = arith.constant 0 : index
    %5 = vector.load %arg5[%c0_6, %c1, %c0_7] : memref<2x10x128xbf16, #tpu.memory_space<vmem>>, vector<2x8x128xbf16>
    tpu.vector_store %arg5[%c0_6, %c1, %c0_7], %4 {strides = array<i32>} : memref<2x10x128xbf16, #tpu.memory_space<vmem>>, vector<2x8x128xbf16>,
    %c0_8 = arith.constant 0 : index
    %c0_9 = arith.constant 0 : index
    %c0_10 = arith.constant 0 : index
    %6 = vector.load %arg5[%c0_8, %c0_9, %c0_10] : memref<2x10x128xbf16, #tpu.memory_space<vmem>>, vector<2x8x128xbf16>
    %7 = vector.shape_cast %6 : vector<2x8x128xbf16> to vector<16x128xbf16>
    %c0_11 = arith.constant 0 : index
    %c0_12 = arith.constant 0 : index
    %c0_13 = arith.constant 0 : index
    %c0_14 = arith.constant 0 : index
    %8 = vector.load %arg2[%c0_11, %c0_12, %c0_13, %c0_14] : memref<8x3x128x128xbf16, #tpu.memory_space<vmem>>, vector<1x1x128x128xbf16>
    %9 = vector.shape_cast %8 : vector<1x1x128x128xbf16> to vector<128x128xbf16>
    %cst_15 = arith.constant dense<0.000000e+00> : vector<16x128xf32>
    %10 = tpu.matmul %7, %9, %cst_15 {dimension_numbers = #tpu.dot_dimension_numbers<[1], [0], [0], [1], [0, 0, 1, 1], [], []>} : vector<16x128xbf16>, vector<128x128xbf16>, vector<16x128xf32> -> vector<16x128xf32>
    %c0_16 = arith.constant 0 : index
    %c1_17 = arith.constant 1 : index
    %c0_18 = arith.constant 0 : index
    %11 = vector.load %arg5[%c0_16, %c1_17, %c0_18] : memref<2x10x128xbf16, #tpu.memory_space<vmem>>, vector<2x8x128xbf16>
    %12 = vector.shape_cast %11 : vector<2x8x128xbf16> to vector<16x128xbf16>
    %c0_19 = arith.constant 0 : index
    %c1_20 = arith.constant 1 : index
    %c0_21 = arith.constant 0 : index
    %c0_22 = arith.constant 0 : index
    %13 = vector.load %arg2[%c0_19, %c1_20, %c0_21, %c0_22] : memref<8x3x128x128xbf16, #tpu.memory_space<vmem>>, vector<1x1x128x128xbf16>
    %14 = vector.shape_cast %13 : vector<1x1x128x128xbf16> to vector<128x128xbf16>
    %cst_23 = arith.constant dense<0.000000e+00> : vector<16x128xf32>
    %15 = tpu.matmul %12, %14, %cst_23 {dimension_numbers = #tpu.dot_dimension_numbers<[1], [0], [0], [1], [0, 0, 1, 1], [], []>} : vector<16x128xbf16>, vector<128x128xbf16>, vector<16x128xf32> -> vector<16x128xf32>
    %16 = arith.addf %10, %15 : vector<16x128xf32>
    %c0_24 = arith.constant 0 : index
    %c2 = arith.constant 2 : index
    %c0_25 = arith.constant 0 : index
    %17 = vector.load %arg5[%c0_24, %c2, %c0_25] : memref<2x10x128xbf16, #tpu.memory_space<vmem>>, vector<2x8x128xbf16>
    %18 = vector.shape_cast %17 : vector<2x8x128xbf16> to vector<16x128xbf16>
    %c0_26 = arith.constant 0 : index
    %c2_27 = arith.constant 2 : index
    %c0_28 = arith.constant 0 : index
    %c0_29 = arith.constant 0 : index
    %19 = vector.load %arg2[%c0_26, %c2_27, %c0_28, %c0_29] : memref<8x3x128x128xbf16, #tpu.memory_space<vmem>>, vector<1x1x128x128xbf16>
    %20 = vector.shape_cast %19 : vector<1x1x128x128xbf16> to vector<128x128xbf16>
    %cst_30 = arith.constant dense<0.000000e+00> : vector<16x128xf32>
    %21 = tpu.matmul %18, %20, %cst_30 {dimension_numbers = #tpu.dot_dimension_numbers<[1], [0], [0], [1], [0, 0, 1, 1], [], []>} : vector<16x128xbf16>, vector<128x128xbf16>, vector<16x128xf32> -> vector<16x128xf32>
    %22 = arith.addf %16, %21 : vector<16x128xf32>
    %c0_31 = arith.constant 0 : index
    %c0_32 = arith.constant 0 : index
    %23 = vector.load %arg3[%c0_31, %c0_32] : memref<8x128xf32, #tpu.memory_space<vmem>>, vector<1x128xf32>
    %24 = vector.broadcast %23 : vector<1x128xf32> to vector<16x128xf32>
    %25 = arith.addf %22, %24 : vector<16x128xf32>
    %cst_33 = arith.constant 0.000000e+00 : f32
    %26 = vector.broadcast %cst_33 : f32 to vector<16x128xf32>
    %27 = arith.maximumf %25, %26 : vector<16x128xf32>
    %28 = vector.shape_cast %27 : vector<16x128xf32> to vector<2x8x128xf32>
    %29 = arith.truncf %28 : vector<2x8x128xf32> to vector<2x8x128xbf16>
    %c0_34 = arith.constant 0 : index
    %c1_35 = arith.constant 1 : index
    %c0_36 = arith.constant 0 : index
    %30 = vector.load %arg5[%c0_34, %c1_35, %c0_36] : memref<2x10x128xbf16, #tpu.memory_space<vmem>>, vector<2x8x128xbf16>
    tpu.vector_store %arg5[%c0_34, %c1_35, %c0_36], %29 {strides = array<i32>} : memref<2x10x128xbf16, #tpu.memory_space<vmem>>, vector<2x8x128xbf16>,
    %c0_37 = arith.constant 0 : index
    %c0_38 = arith.constant 0 : index
    %c0_39 = arith.constant 0 : index
    %31 = vector.load %arg5[%c0_37, %c0_38, %c0_39] : memref<2x10x128xbf16, #tpu.memory_space<vmem>>, vector<2x8x128xbf16>
    %32 = vector.shape_cast %31 : vector<2x8x128xbf16> to vector<16x128xbf16>
    %c1_40 = arith.constant 1 : index
    %c0_41 = arith.constant 0 : index
    %c0_42 = arith.constant 0 : index
    %c0_43 = arith.constant 0 : index
    %33 = vector.load %arg2[%c1_40, %c0_41, %c0_42, %c0_43] : memref<8x3x128x128xbf16, #tpu.memory_space<vmem>>, vector<1x1x128x128xbf16>
    %34 = vector.shape_cast %33 : vector<1x1x128x128xbf16> to vector<128x128xbf16>
    %cst_44 = arith.constant dense<0.000000e+00> : vector<16x128xf32>
    %35 = tpu.matmul %32, %34, %cst_44 {dimension_numbers = #tpu.dot_dimension_numbers<[1], [0], [0], [1], [0, 0, 1, 1], [], []>} : vector<16x128xbf16>, vector<128x128xbf16>, vector<16x128xf32> -> vector<16x128xf32>
    %c0_45 = arith.constant 0 : index
    %c1_46 = arith.constant 1 : index
    %c0_47 = arith.constant 0 : index
    %36 = vector.load %arg5[%c0_45, %c1_46, %c0_47] : memref<2x10x128xbf16, #tpu.memory_space<vmem>>, vector<2x8x128xbf16>
    %37 = vector.shape_cast %36 : vector<2x8x128xbf16> to vector<16x128xbf16>
    %c1_48 = arith.constant 1 : index
    %c1_49 = arith.constant 1 : index
    %c0_50 = arith.constant 0 : index
    %c0_51 = arith.constant 0 : index
    %38 = vector.load %arg2[%c1_48, %c1_49, %c0_50, %c0_51] : memref<8x3x128x128xbf16, #tpu.memory_space<vmem>>, vector<1x1x128x128xbf16>
    %39 = vector.shape_cast %38 : vector<1x1x128x128xbf16> to vector<128x128xbf16>
    %cst_52 = arith.constant dense<0.000000e+00> : vector<16x128xf32>
    %40 = tpu.matmul %37, %39, %cst_52 {dimension_numbers = #tpu.dot_dimension_numbers<[1], [0], [0], [1], [0, 0, 1, 1], [], []>} : vector<16x128xbf16>, vector<128x128xbf16>, vector<16x128xf32> -> vector<16x128xf32>
    %41 = arith.addf %35, %40 : vector<16x128xf32>
    %c0_53 = arith.constant 0 : index
    %c2_54 = arith.constant 2 : index
    %c0_55 = arith.constant 0 : index
    %42 = vector.load %arg5[%c0_53, %c2_54, %c0_55] : memref<2x10x128xbf16, #tpu.memory_space<vmem>>, vector<2x8x128xbf16>
    %43 = vector.shape_cast %42 : vector<2x8x128xbf16> to vector<16x128xbf16>
    %c1_56 = arith.constant 1 : index
    %c2_57 = arith.constant 2 : index
    %c0_58 = arith.constant 0 : index
    %c0_59 = arith.constant 0 : index
    %44 = vector.load %arg2[%c1_56, %c2_57, %c0_58, %c0_59] : memref<8x3x128x128xbf16, #tpu.memory_space<vmem>>, vector<1x1x128x128xbf16>
    %45 = vector.shape_cast %44 : vector<1x1x128x128xbf16> to vector<128x128xbf16>
    %cst_60 = arith.constant dense<0.000000e+00> : vector<16x128xf32>
    %46 = tpu.matmul %43, %45, %cst_60 {dimension_numbers = #tpu.dot_dimension_numbers<[1], [0], [0], [1], [0, 0, 1, 1], [], []>} : vector<16x128xbf16>, vector<128x128xbf16>, vector<16x128xf32> -> vector<16x128xf32>
    %47 = arith.addf %41, %46 : vector<16x128xf32>
    %c1_61 = arith.constant 1 : index
    %c0_62 = arith.constant 0 : index
    %48 = vector.load %arg3[%c1_61, %c0_62] : memref<8x128xf32, #tpu.memory_space<vmem>>, vector<1x128xf32>
    %49 = vector.broadcast %48 : vector<1x128xf32> to vector<16x128xf32>
    %50 = arith.addf %47, %49 : vector<16x128xf32>
    %cst_63 = arith.constant 0.000000e+00 : f32
    %51 = vector.broadcast %cst_63 : f32 to vector<16x128xf32>
    %52 = arith.maximumf %50, %51 : vector<16x128xf32>
    %53 = vector.shape_cast %52 : vector<16x128xf32> to vector<2x8x128xf32>
    %54 = arith.truncf %53 : vector<2x8x128xf32> to vector<2x8x128xbf16>
    %c0_64 = arith.constant 0 : index
    %c1_65 = arith.constant 1 : index
    %c0_66 = arith.constant 0 : index
    %55 = vector.load %arg5[%c0_64, %c1_65, %c0_66] : memref<2x10x128xbf16, #tpu.memory_space<vmem>>, vector<2x8x128xbf16>
    tpu.vector_store %arg5[%c0_64, %c1_65, %c0_66], %54 {strides = array<i32>} : memref<2x10x128xbf16, #tpu.memory_space<vmem>>, vector<2x8x128xbf16>,
    %c0_67 = arith.constant 0 : index
    %c0_68 = arith.constant 0 : index
    %c0_69 = arith.constant 0 : index
    %56 = vector.load %arg5[%c0_67, %c0_68, %c0_69] : memref<2x10x128xbf16, #tpu.memory_space<vmem>>, vector<2x8x128xbf16>
    %57 = vector.shape_cast %56 : vector<2x8x128xbf16> to vector<16x128xbf16>
    %c2_70 = arith.constant 2 : index
    %c0_71 = arith.constant 0 : index
    %c0_72 = arith.constant 0 : index
    %c0_73 = arith.constant 0 : index
    %58 = vector.load %arg2[%c2_70, %c0_71, %c0_72, %c0_73] : memref<8x3x128x128xbf16, #tpu.memory_space<vmem>>, vector<1x1x128x128xbf16>
    %59 = vector.shape_cast %58 : vector<1x1x128x128xbf16> to vector<128x128xbf16>
    %cst_74 = arith.constant dense<0.000000e+00> : vector<16x128xf32>
    %60 = tpu.matmul %57, %59, %cst_74 {dimension_numbers = #tpu.dot_dimension_numbers<[1], [0], [0], [1], [0, 0, 1, 1], [], []>} : vector<16x128xbf16>, vector<128x128xbf16>, vector<16x128xf32> -> vector<16x128xf32>
    %c0_75 = arith.constant 0 : index
    %c1_76 = arith.constant 1 : index
    %c0_77 = arith.constant 0 : index
    %61 = vector.load %arg5[%c0_75, %c1_76, %c0_77] : memref<2x10x128xbf16, #tpu.memory_space<vmem>>, vector<2x8x128xbf16>
    %62 = vector.shape_cast %61 : vector<2x8x128xbf16> to vector<16x128xbf16>
    %c2_78 = arith.constant 2 : index
    %c1_79 = arith.constant 1 : index
    %c0_80 = arith.constant 0 : index
    %c0_81 = arith.constant 0 : index
    %63 = vector.load %arg2[%c2_78, %c1_79, %c0_80, %c0_81] : memref<8x3x128x128xbf16, #tpu.memory_space<vmem>>, vector<1x1x128x128xbf16>
    %64 = vector.shape_cast %63 : vector<1x1x128x128xbf16> to vector<128x128xbf16>
    %cst_82 = arith.constant dense<0.000000e+00> : vector<16x128xf32>
    %65 = tpu.matmul %62, %64, %cst_82 {dimension_numbers = #tpu.dot_dimension_numbers<[1], [0], [0], [1], [0, 0, 1, 1], [], []>} : vector<16x128xbf16>, vector<128x128xbf16>, vector<16x128xf32> -> vector<16x128xf32>
    %66 = arith.addf %60, %65 : vector<16x128xf32>
    %c0_83 = arith.constant 0 : index
    %c2_84 = arith.constant 2 : index
    %c0_85 = arith.constant 0 : index
    %67 = vector.load %arg5[%c0_83, %c2_84, %c0_85] : memref<2x10x128xbf16, #tpu.memory_space<vmem>>, vector<2x8x128xbf16>
    %68 = vector.shape_cast %67 : vector<2x8x128xbf16> to vector<16x128xbf16>
    %c2_86 = arith.constant 2 : index
    %c2_87 = arith.constant 2 : index
    %c0_88 = arith.constant 0 : index
    %c0_89 = arith.constant 0 : index
    %69 = vector.load %arg2[%c2_86, %c2_87, %c0_88, %c0_89] : memref<8x3x128x128xbf16, #tpu.memory_space<vmem>>, vector<1x1x128x128xbf16>
    %70 = vector.shape_cast %69 : vector<1x1x128x128xbf16> to vector<128x128xbf16>
    %cst_90 = arith.constant dense<0.000000e+00> : vector<16x128xf32>
    %71 = tpu.matmul %68, %70, %cst_90 {dimension_numbers = #tpu.dot_dimension_numbers<[1], [0], [0], [1], [0, 0, 1, 1], [], []>} : vector<16x128xbf16>, vector<128x128xbf16>, vector<16x128xf32> -> vector<16x128xf32>
    %72 = arith.addf %66, %71 : vector<16x128xf32>
    %c2_91 = arith.constant 2 : index
    %c0_92 = arith.constant 0 : index
    %73 = vector.load %arg3[%c2_91, %c0_92] : memref<8x128xf32, #tpu.memory_space<vmem>>, vector<1x128xf32>
    %74 = vector.broadcast %73 : vector<1x128xf32> to vector<16x128xf32>
    %75 = arith.addf %72, %74 : vector<16x128xf32>
    %76 = arith.addf %27, %75 : vector<16x128xf32>
    %cst_93 = arith.constant 0.000000e+00 : f32
    %77 = vector.broadcast %cst_93 : f32 to vector<16x128xf32>
    %78 = arith.maximumf %76, %77 : vector<16x128xf32>
    %79 = vector.shape_cast %78 : vector<16x128xf32> to vector<2x8x128xf32>
    %80 = arith.truncf %79 : vector<2x8x128xf32> to vector<2x8x128xbf16>
    %c0_94 = arith.constant 0 : index
    %c1_95 = arith.constant 1 : index
    %c0_96 = arith.constant 0 : index
    %81 = vector.load %arg5[%c0_94, %c1_95, %c0_96] : memref<2x10x128xbf16, #tpu.memory_space<vmem>>, vector<2x8x128xbf16>
    tpu.vector_store %arg5[%c0_94, %c1_95, %c0_96], %80 {strides = array<i32>} : memref<2x10x128xbf16, #tpu.memory_space<vmem>>, vector<2x8x128xbf16>,
    %c0_97 = arith.constant 0 : index
    %c0_98 = arith.constant 0 : index
    %c0_99 = arith.constant 0 : index
    %82 = vector.load %arg5[%c0_97, %c0_98, %c0_99] : memref<2x10x128xbf16, #tpu.memory_space<vmem>>, vector<2x8x128xbf16>
    %83 = vector.shape_cast %82 : vector<2x8x128xbf16> to vector<16x128xbf16>
    %c3 = arith.constant 3 : index
    %c0_100 = arith.constant 0 : index
    %c0_101 = arith.constant 0 : index
    %c0_102 = arith.constant 0 : index
    %84 = vector.load %arg2[%c3, %c0_100, %c0_101, %c0_102] : memref<8x3x128x128xbf16, #tpu.memory_space<vmem>>, vector<1x1x128x128xbf16>
    %85 = vector.shape_cast %84 : vector<1x1x128x128xbf16> to vector<128x128xbf16>
    %cst_103 = arith.constant dense<0.000000e+00> : vector<16x128xf32>
    %86 = tpu.matmul %83, %85, %cst_103 {dimension_numbers = #tpu.dot_dimension_numbers<[1], [0], [0], [1], [0, 0, 1, 1], [], []>} : vector<16x128xbf16>, vector<128x128xbf16>, vector<16x128xf32> -> vector<16x128xf32>
    %c0_104 = arith.constant 0 : index
    %c1_105 = arith.constant 1 : index
    %c0_106 = arith.constant 0 : index
    %87 = vector.load %arg5[%c0_104, %c1_105, %c0_106] : memref<2x10x128xbf16, #tpu.memory_space<vmem>>, vector<2x8x128xbf16>
    %88 = vector.shape_cast %87 : vector<2x8x128xbf16> to vector<16x128xbf16>
    %c3_107 = arith.constant 3 : index
    %c1_108 = arith.constant 1 : index
    %c0_109 = arith.constant 0 : index
    %c0_110 = arith.constant 0 : index
    %89 = vector.load %arg2[%c3_107, %c1_108, %c0_109, %c0_110] : memref<8x3x128x128xbf16, #tpu.memory_space<vmem>>, vector<1x1x128x128xbf16>
    %90 = vector.shape_cast %89 : vector<1x1x128x128xbf16> to vector<128x128xbf16>
    %cst_111 = arith.constant dense<0.000000e+00> : vector<16x128xf32>
    %91 = tpu.matmul %88, %90, %cst_111 {dimension_numbers = #tpu.dot_dimension_numbers<[1], [0], [0], [1], [0, 0, 1, 1], [], []>} : vector<16x128xbf16>, vector<128x128xbf16>, vector<16x128xf32> -> vector<16x128xf32>
    %92 = arith.addf %86, %91 : vector<16x128xf32>
    %c0_112 = arith.constant 0 : index
    %c2_113 = arith.constant 2 : index
    %c0_114 = arith.constant 0 : index
    %93 = vector.load %arg5[%c0_112, %c2_113, %c0_114] : memref<2x10x128xbf16, #tpu.memory_space<vmem>>, vector<2x8x128xbf16>
    %94 = vector.shape_cast %93 : vector<2x8x128xbf16> to vector<16x128xbf16>
    %c3_115 = arith.constant 3 : index
    %c2_116 = arith.constant 2 : index
    %c0_117 = arith.constant 0 : index
    %c0_118 = arith.constant 0 : index
    %95 = vector.load %arg2[%c3_115, %c2_116, %c0_117, %c0_118] : memref<8x3x128x128xbf16, #tpu.memory_space<vmem>>, vector<1x1x128x128xbf16>
    %96 = vector.shape_cast %95 : vector<1x1x128x128xbf16> to vector<128x128xbf16>
    %cst_119 = arith.constant dense<0.000000e+00> : vector<16x128xf32>
    %97 = tpu.matmul %94, %96, %cst_119 {dimension_numbers = #tpu.dot_dimension_numbers<[1], [0], [0], [1], [0, 0, 1, 1], [], []>} : vector<16x128xbf16>, vector<128x128xbf16>, vector<16x128xf32> -> vector<16x128xf32>
    %98 = arith.addf %92, %97 : vector<16x128xf32>
    %c3_120 = arith.constant 3 : index
    %c0_121 = arith.constant 0 : index
    %99 = vector.load %arg3[%c3_120, %c0_121] : memref<8x128xf32, #tpu.memory_space<vmem>>, vector<1x128xf32>
    %100 = vector.broadcast %99 : vector<1x128xf32> to vector<16x128xf32>
    %101 = arith.addf %98, %100 : vector<16x128xf32>
    %cst_122 = arith.constant 0.000000e+00 : f32
    %102 = vector.broadcast %cst_122 : f32 to vector<16x128xf32>
    %103 = arith.maximumf %101, %102 : vector<16x128xf32>
    %104 = vector.shape_cast %103 : vector<16x128xf32> to vector<2x8x128xf32>
    %105 = arith.truncf %104 : vector<2x8x128xf32> to vector<2x8x128xbf16>
    %c0_123 = arith.constant 0 : index
    %c1_124 = arith.constant 1 : index
    %c0_125 = arith.constant 0 : index
    %106 = vector.load %arg5[%c0_123, %c1_124, %c0_125] : memref<2x10x128xbf16, #tpu.memory_space<vmem>>, vector<2x8x128xbf16>
    tpu.vector_store %arg5[%c0_123, %c1_124, %c0_125], %105 {strides = array<i32>} : memref<2x10x128xbf16, #tpu.memory_space<vmem>>, vector<2x8x128xbf16>,
    %c0_126 = arith.constant 0 : index
    %c0_127 = arith.constant 0 : index
    %c0_128 = arith.constant 0 : index
    %107 = vector.load %arg5[%c0_126, %c0_127, %c0_128] : memref<2x10x128xbf16, #tpu.memory_space<vmem>>, vector<2x8x128xbf16>
    %108 = vector.shape_cast %107 : vector<2x8x128xbf16> to vector<16x128xbf16>
    %c4 = arith.constant 4 : index
    %c0_129 = arith.constant 0 : index
    %c0_130 = arith.constant 0 : index
    %c0_131 = arith.constant 0 : index
    %109 = vector.load %arg2[%c4, %c0_129, %c0_130, %c0_131] : memref<8x3x128x128xbf16, #tpu.memory_space<vmem>>, vector<1x1x128x128xbf16>
    %110 = vector.shape_cast %109 : vector<1x1x128x128xbf16> to vector<128x128xbf16>
    %cst_132 = arith.constant dense<0.000000e+00> : vector<16x128xf32>
    %111 = tpu.matmul %108, %110, %cst_132 {dimension_numbers = #tpu.dot_dimension_numbers<[1], [0], [0], [1], [0, 0, 1, 1], [], []>} : vector<16x128xbf16>, vector<128x128xbf16>, vector<16x128xf32> -> vector<16x128xf32>
    %c0_133 = arith.constant 0 : index
    %c1_134 = arith.constant 1 : index
    %c0_135 = arith.constant 0 : index
    %112 = vector.load %arg5[%c0_133, %c1_134, %c0_135] : memref<2x10x128xbf16, #tpu.memory_space<vmem>>, vector<2x8x128xbf16>
    %113 = vector.shape_cast %112 : vector<2x8x128xbf16> to vector<16x128xbf16>
    %c4_136 = arith.constant 4 : index
    %c1_137 = arith.constant 1 : index
    %c0_138 = arith.constant 0 : index
    %c0_139 = arith.constant 0 : index
    %114 = vector.load %arg2[%c4_136, %c1_137, %c0_138, %c0_139] : memref<8x3x128x128xbf16, #tpu.memory_space<vmem>>, vector<1x1x128x128xbf16>
    %115 = vector.shape_cast %114 : vector<1x1x128x128xbf16> to vector<128x128xbf16>
    %cst_140 = arith.constant dense<0.000000e+00> : vector<16x128xf32>
    %116 = tpu.matmul %113, %115, %cst_140 {dimension_numbers = #tpu.dot_dimension_numbers<[1], [0], [0], [1], [0, 0, 1, 1], [], []>} : vector<16x128xbf16>, vector<128x128xbf16>, vector<16x128xf32> -> vector<16x128xf32>
    %117 = arith.addf %111, %116 : vector<16x128xf32>
    %c0_141 = arith.constant 0 : index
    %c2_142 = arith.constant 2 : index
    %c0_143 = arith.constant 0 : index
    %118 = vector.load %arg5[%c0_141, %c2_142, %c0_143] : memref<2x10x128xbf16, #tpu.memory_space<vmem>>, vector<2x8x128xbf16>
    %119 = vector.shape_cast %118 : vector<2x8x128xbf16> to vector<16x128xbf16>
    %c4_144 = arith.constant 4 : index
    %c2_145 = arith.constant 2 : index
    %c0_146 = arith.constant 0 : index
    %c0_147 = arith.constant 0 : index
    %120 = vector.load %arg2[%c4_144, %c2_145, %c0_146, %c0_147] : memref<8x3x128x128xbf16, #tpu.memory_space<vmem>>, vector<1x1x128x128xbf16>
    %121 = vector.shape_cast %120 : vector<1x1x128x128xbf16> to vector<128x128xbf16>
    %cst_148 = arith.constant dense<0.000000e+00> : vector<16x128xf32>
    %122 = tpu.matmul %119, %121, %cst_148 {dimension_numbers = #tpu.dot_dimension_numbers<[1], [0], [0], [1], [0, 0, 1, 1], [], []>} : vector<16x128xbf16>, vector<128x128xbf16>, vector<16x128xf32> -> vector<16x128xf32>
    %123 = arith.addf %117, %122 : vector<16x128xf32>
    %c4_149 = arith.constant 4 : index
    %c0_150 = arith.constant 0 : index
    %124 = vector.load %arg3[%c4_149, %c0_150] : memref<8x128xf32, #tpu.memory_space<vmem>>, vector<1x128xf32>
    %125 = vector.broadcast %124 : vector<1x128xf32> to vector<16x128xf32>
    %126 = arith.addf %123, %125 : vector<16x128xf32>
    %127 = arith.addf %78, %126 : vector<16x128xf32>
    %cst_151 = arith.constant 0.000000e+00 : f32
    %128 = vector.broadcast %cst_151 : f32 to vector<16x128xf32>
    %129 = arith.maximumf %127, %128 : vector<16x128xf32>
    %130 = vector.shape_cast %129 : vector<16x128xf32> to vector<2x8x128xf32>
    %131 = arith.truncf %130 : vector<2x8x128xf32> to vector<2x8x128xbf16>
    %c0_152 = arith.constant 0 : index
    %c1_153 = arith.constant 1 : index
    %c0_154 = arith.constant 0 : index
    %132 = vector.load %arg5[%c0_152, %c1_153, %c0_154] : memref<2x10x128xbf16, #tpu.memory_space<vmem>>, vector<2x8x128xbf16>
    tpu.vector_store %arg5[%c0_152, %c1_153, %c0_154], %131 {strides = array<i32>} : memref<2x10x128xbf16, #tpu.memory_space<vmem>>, vector<2x8x128xbf16>,
    %c0_155 = arith.constant 0 : index
    %c0_156 = arith.constant 0 : index
    %c0_157 = arith.constant 0 : index
    %133 = vector.load %arg5[%c0_155, %c0_156, %c0_157] : memref<2x10x128xbf16, #tpu.memory_space<vmem>>, vector<2x8x128xbf16>
    %134 = vector.shape_cast %133 : vector<2x8x128xbf16> to vector<16x128xbf16>
    %c5 = arith.constant 5 : index
    %c0_158 = arith.constant 0 : index
    %c0_159 = arith.constant 0 : index
    %c0_160 = arith.constant 0 : index
    %135 = vector.load %arg2[%c5, %c0_158, %c0_159, %c0_160] : memref<8x3x128x128xbf16, #tpu.memory_space<vmem>>, vector<1x1x128x128xbf16>
    %136 = vector.shape_cast %135 : vector<1x1x128x128xbf16> to vector<128x128xbf16>
    %cst_161 = arith.constant dense<0.000000e+00> : vector<16x128xf32>
    %137 = tpu.matmul %134, %136, %cst_161 {dimension_numbers = #tpu.dot_dimension_numbers<[1], [0], [0], [1], [0, 0, 1, 1], [], []>} : vector<16x128xbf16>, vector<128x128xbf16>, vector<16x128xf32> -> vector<16x128xf32>
    %c0_162 = arith.constant 0 : index
    %c1_163 = arith.constant 1 : index
    %c0_164 = arith.constant 0 : index
    %138 = vector.load %arg5[%c0_162, %c1_163, %c0_164] : memref<2x10x128xbf16, #tpu.memory_space<vmem>>, vector<2x8x128xbf16>
    %139 = vector.shape_cast %138 : vector<2x8x128xbf16> to vector<16x128xbf16>
    %c5_165 = arith.constant 5 : index
    %c1_166 = arith.constant 1 : index
    %c0_167 = arith.constant 0 : index
    %c0_168 = arith.constant 0 : index
    %140 = vector.load %arg2[%c5_165, %c1_166, %c0_167, %c0_168] : memref<8x3x128x128xbf16, #tpu.memory_space<vmem>>, vector<1x1x128x128xbf16>
    %141 = vector.shape_cast %140 : vector<1x1x128x128xbf16> to vector<128x128xbf16>
    %cst_169 = arith.constant dense<0.000000e+00> : vector<16x128xf32>
    %142 = tpu.matmul %139, %141, %cst_169 {dimension_numbers = #tpu.dot_dimension_numbers<[1], [0], [0], [1], [0, 0, 1, 1], [], []>} : vector<16x128xbf16>, vector<128x128xbf16>, vector<16x128xf32> -> vector<16x128xf32>
    %143 = arith.addf %137, %142 : vector<16x128xf32>
    %c0_170 = arith.constant 0 : index
    %c2_171 = arith.constant 2 : index
    %c0_172 = arith.constant 0 : index
    %144 = vector.load %arg5[%c0_170, %c2_171, %c0_172] : memref<2x10x128xbf16, #tpu.memory_space<vmem>>, vector<2x8x128xbf16>
    %145 = vector.shape_cast %144 : vector<2x8x128xbf16> to vector<16x128xbf16>
    %c5_173 = arith.constant 5 : index
    %c2_174 = arith.constant 2 : index
    %c0_175 = arith.constant 0 : index
    %c0_176 = arith.constant 0 : index
    %146 = vector.load %arg2[%c5_173, %c2_174, %c0_175, %c0_176] : memref<8x3x128x128xbf16, #tpu.memory_space<vmem>>, vector<1x1x128x128xbf16>
    %147 = vector.shape_cast %146 : vector<1x1x128x128xbf16> to vector<128x128xbf16>
    %cst_177 = arith.constant dense<0.000000e+00> : vector<16x128xf32>
    %148 = tpu.matmul %145, %147, %cst_177 {dimension_numbers = #tpu.dot_dimension_numbers<[1], [0], [0], [1], [0, 0, 1, 1], [], []>} : vector<16x128xbf16>, vector<128x128xbf16>, vector<16x128xf32> -> vector<16x128xf32>
    %149 = arith.addf %143, %148 : vector<16x128xf32>
    %c5_178 = arith.constant 5 : index
    %c0_179 = arith.constant 0 : index
    %150 = vector.load %arg3[%c5_178, %c0_179] : memref<8x128xf32, #tpu.memory_space<vmem>>, vector<1x128xf32>
    %151 = vector.broadcast %150 : vector<1x128xf32> to vector<16x128xf32>
    %152 = arith.addf %149, %151 : vector<16x128xf32>
    %cst_180 = arith.constant 0.000000e+00 : f32
    %153 = vector.broadcast %cst_180 : f32 to vector<16x128xf32>
    %154 = arith.maximumf %152, %153 : vector<16x128xf32>
    %155 = vector.shape_cast %154 : vector<16x128xf32> to vector<2x8x128xf32>
    %156 = arith.truncf %155 : vector<2x8x128xf32> to vector<2x8x128xbf16>
    %c0_181 = arith.constant 0 : index
    %c1_182 = arith.constant 1 : index
    %c0_183 = arith.constant 0 : index
    %157 = vector.load %arg5[%c0_181, %c1_182, %c0_183] : memref<2x10x128xbf16, #tpu.memory_space<vmem>>, vector<2x8x128xbf16>
    tpu.vector_store %arg5[%c0_181, %c1_182, %c0_183], %156 {strides = array<i32>} : memref<2x10x128xbf16, #tpu.memory_space<vmem>>, vector<2x8x128xbf16>,
    %c0_184 = arith.constant 0 : index
    %c0_185 = arith.constant 0 : index
    %c0_186 = arith.constant 0 : index
    %158 = vector.load %arg5[%c0_184, %c0_185, %c0_186] : memref<2x10x128xbf16, #tpu.memory_space<vmem>>, vector<2x8x128xbf16>
    %159 = vector.shape_cast %158 : vector<2x8x128xbf16> to vector<16x128xbf16>
    %c6 = arith.constant 6 : index
    %c0_187 = arith.constant 0 : index
    %c0_188 = arith.constant 0 : index
    %c0_189 = arith.constant 0 : index
    %160 = vector.load %arg2[%c6, %c0_187, %c0_188, %c0_189] : memref<8x3x128x128xbf16, #tpu.memory_space<vmem>>, vector<1x1x128x128xbf16>
    %161 = vector.shape_cast %160 : vector<1x1x128x128xbf16> to vector<128x128xbf16>
    %cst_190 = arith.constant dense<0.000000e+00> : vector<16x128xf32>
    %162 = tpu.matmul %159, %161, %cst_190 {dimension_numbers = #tpu.dot_dimension_numbers<[1], [0], [0], [1], [0, 0, 1, 1], [], []>} : vector<16x128xbf16>, vector<128x128xbf16>, vector<16x128xf32> -> vector<16x128xf32>
    %c0_191 = arith.constant 0 : index
    %c1_192 = arith.constant 1 : index
    %c0_193 = arith.constant 0 : index
    %163 = vector.load %arg5[%c0_191, %c1_192, %c0_193] : memref<2x10x128xbf16, #tpu.memory_space<vmem>>, vector<2x8x128xbf16>
    %164 = vector.shape_cast %163 : vector<2x8x128xbf16> to vector<16x128xbf16>
    %c6_194 = arith.constant 6 : index
    %c1_195 = arith.constant 1 : index
    %c0_196 = arith.constant 0 : index
    %c0_197 = arith.constant 0 : index
    %165 = vector.load %arg2[%c6_194, %c1_195, %c0_196, %c0_197] : memref<8x3x128x128xbf16, #tpu.memory_space<vmem>>, vector<1x1x128x128xbf16>
    %166 = vector.shape_cast %165 : vector<1x1x128x128xbf16> to vector<128x128xbf16>
    %cst_198 = arith.constant dense<0.000000e+00> : vector<16x128xf32>
    %167 = tpu.matmul %164, %166, %cst_198 {dimension_numbers = #tpu.dot_dimension_numbers<[1], [0], [0], [1], [0, 0, 1, 1], [], []>} : vector<16x128xbf16>, vector<128x128xbf16>, vector<16x128xf32> -> vector<16x128xf32>
    %168 = arith.addf %162, %167 : vector<16x128xf32>
    %c0_199 = arith.constant 0 : index
    %c2_200 = arith.constant 2 : index
    %c0_201 = arith.constant 0 : index
    %169 = vector.load %arg5[%c0_199, %c2_200, %c0_201] : memref<2x10x128xbf16, #tpu.memory_space<vmem>>, vector<2x8x128xbf16>
    %170 = vector.shape_cast %169 : vector<2x8x128xbf16> to vector<16x128xbf16>
    %c6_202 = arith.constant 6 : index
    %c2_203 = arith.constant 2 : index
    %c0_204 = arith.constant 0 : index
    %c0_205 = arith.constant 0 : index
    %171 = vector.load %arg2[%c6_202, %c2_203, %c0_204, %c0_205] : memref<8x3x128x128xbf16, #tpu.memory_space<vmem>>, vector<1x1x128x128xbf16>
    %172 = vector.shape_cast %171 : vector<1x1x128x128xbf16> to vector<128x128xbf16>
    %cst_206 = arith.constant dense<0.000000e+00> : vector<16x128xf32>
    %173 = tpu.matmul %170, %172, %cst_206 {dimension_numbers = #tpu.dot_dimension_numbers<[1], [0], [0], [1], [0, 0, 1, 1], [], []>} : vector<16x128xbf16>, vector<128x128xbf16>, vector<16x128xf32> -> vector<16x128xf32>
    %174 = arith.addf %168, %173 : vector<16x128xf32>
    %c6_207 = arith.constant 6 : index
    %c0_208 = arith.constant 0 : index
    %175 = vector.load %arg3[%c6_207, %c0_208] : memref<8x128xf32, #tpu.memory_space<vmem>>, vector<1x128xf32>
    %176 = vector.broadcast %175 : vector<1x128xf32> to vector<16x128xf32>
    %177 = arith.addf %174, %176 : vector<16x128xf32>
    %178 = arith.addf %129, %177 : vector<16x128xf32>
    %cst_209 = arith.constant 0.000000e+00 : f32
    %179 = vector.broadcast %cst_209 : f32 to vector<16x128xf32>
    %180 = arith.maximumf %178, %179 : vector<16x128xf32>
    %181 = vector.shape_cast %180 : vector<16x128xf32> to vector<2x8x128xf32>
    %182 = arith.truncf %181 : vector<2x8x128xf32> to vector<2x8x128xbf16>
    %c0_210 = arith.constant 0 : index
    %c1_211 = arith.constant 1 : index
    %c0_212 = arith.constant 0 : index
    %183 = vector.load %arg5[%c0_210, %c1_211, %c0_212] : memref<2x10x128xbf16, #tpu.memory_space<vmem>>, vector<2x8x128xbf16>
    tpu.vector_store %arg5[%c0_210, %c1_211, %c0_212], %182 {strides = array<i32>} : memref<2x10x128xbf16, #tpu.memory_space<vmem>>, vector<2x8x128xbf16>,
    %c0_213 = arith.constant 0 : index
    %c0_214 = arith.constant 0 : index
    %c0_215 = arith.constant 0 : index
    %184 = vector.load %arg5[%c0_213, %c0_214, %c0_215] : memref<2x10x128xbf16, #tpu.memory_space<vmem>>, vector<2x8x128xbf16>
    %185 = vector.shape_cast %184 : vector<2x8x128xbf16> to vector<16x128xbf16>
    %c7 = arith.constant 7 : index
    %c0_216 = arith.constant 0 : index
    %c0_217 = arith.constant 0 : index
    %c0_218 = arith.constant 0 : index
    %186 = vector.load %arg2[%c7, %c0_216, %c0_217, %c0_218] : memref<8x3x128x128xbf16, #tpu.memory_space<vmem>>, vector<1x1x128x128xbf16>
    %187 = vector.shape_cast %186 : vector<1x1x128x128xbf16> to vector<128x128xbf16>
    %cst_219 = arith.constant dense<0.000000e+00> : vector<16x128xf32>
    %188 = tpu.matmul %185, %187, %cst_219 {dimension_numbers = #tpu.dot_dimension_numbers<[1], [0], [0], [1], [0, 0, 1, 1], [], []>} : vector<16x128xbf16>, vector<128x128xbf16>, vector<16x128xf32> -> vector<16x128xf32>
    %c0_220 = arith.constant 0 : index
    %c1_221 = arith.constant 1 : index
    %c0_222 = arith.constant 0 : index
    %189 = vector.load %arg5[%c0_220, %c1_221, %c0_222] : memref<2x10x128xbf16, #tpu.memory_space<vmem>>, vector<2x8x128xbf16>
    %190 = vector.shape_cast %189 : vector<2x8x128xbf16> to vector<16x128xbf16>
    %c7_223 = arith.constant 7 : index
    %c1_224 = arith.constant 1 : index
    %c0_225 = arith.constant 0 : index
    %c0_226 = arith.constant 0 : index
    %191 = vector.load %arg2[%c7_223, %c1_224, %c0_225, %c0_226] : memref<8x3x128x128xbf16, #tpu.memory_space<vmem>>, vector<1x1x128x128xbf16>
    %192 = vector.shape_cast %191 : vector<1x1x128x128xbf16> to vector<128x128xbf16>
    %cst_227 = arith.constant dense<0.000000e+00> : vector<16x128xf32>
    %193 = tpu.matmul %190, %192, %cst_227 {dimension_numbers = #tpu.dot_dimension_numbers<[1], [0], [0], [1], [0, 0, 1, 1], [], []>} : vector<16x128xbf16>, vector<128x128xbf16>, vector<16x128xf32> -> vector<16x128xf32>
    %194 = arith.addf %188, %193 : vector<16x128xf32>
    %c0_228 = arith.constant 0 : index
    %c2_229 = arith.constant 2 : index
    %c0_230 = arith.constant 0 : index
    %195 = vector.load %arg5[%c0_228, %c2_229, %c0_230] : memref<2x10x128xbf16, #tpu.memory_space<vmem>>, vector<2x8x128xbf16>
    %196 = vector.shape_cast %195 : vector<2x8x128xbf16> to vector<16x128xbf16>
    %c7_231 = arith.constant 7 : index
    %c2_232 = arith.constant 2 : index
    %c0_233 = arith.constant 0 : index
    %c0_234 = arith.constant 0 : index
    %197 = vector.load %arg2[%c7_231, %c2_232, %c0_233, %c0_234] : memref<8x3x128x128xbf16, #tpu.memory_space<vmem>>, vector<1x1x128x128xbf16>
    %198 = vector.shape_cast %197 : vector<1x1x128x128xbf16> to vector<128x128xbf16>
    %cst_235 = arith.constant dense<0.000000e+00> : vector<16x128xf32>
    %199 = tpu.matmul %196, %198, %cst_235 {dimension_numbers = #tpu.dot_dimension_numbers<[1], [0], [0], [1], [0, 0, 1, 1], [], []>} : vector<16x128xbf16>, vector<128x128xbf16>, vector<16x128xf32> -> vector<16x128xf32>
    %200 = arith.addf %194, %199 : vector<16x128xf32>
    %c7_236 = arith.constant 7 : index
    %c0_237 = arith.constant 0 : index
    %201 = vector.load %arg3[%c7_236, %c0_237] : memref<8x128xf32, #tpu.memory_space<vmem>>, vector<1x128xf32>
    %202 = vector.broadcast %201 : vector<1x128xf32> to vector<16x128xf32>
    %203 = arith.addf %200, %202 : vector<16x128xf32>
    %cst_238 = arith.constant 0.000000e+00 : f32
    %204 = vector.broadcast %cst_238 : f32 to vector<16x128xf32>
    %205 = arith.maximumf %203, %204 : vector<16x128xf32>
    %c0_239 = arith.constant 0 : index
    %c0_240 = arith.constant 0 : index
    %206 = vector.load %arg4[%c0_239, %c0_240] : memref<16x128xf32, #tpu.memory_space<vmem>>, vector<16x128xf32>
    tpu.vector_store %arg4[%c0_239, %c0_240], %205 {strides = array<i32>} : memref<16x128xf32, #tpu.memory_space<vmem>>, vector<16x128xf32>,
    return
  }
  func.func @transform_0(%arg0: i32) -> (i32, i32) {
    %c0_i32 = arith.constant 0 : i32
    %c0_i32_0 = arith.constant 0 : i32
    return %arg0, %c0_i32 : i32, i32
  }
  func.func @transform_1(%arg0: i32) -> (i32, i32, i32, i32) {
    %c0_i32 = arith.constant 0 : i32
    %c0_i32_0 = arith.constant 0 : i32
    %c0_i32_1 = arith.constant 0 : i32
    %c0_i32_2 = arith.constant 0 : i32
    %c0_i32_3 = arith.constant 0 : i32
    return %c0_i32, %c0_i32_0, %c0_i32_1, %c0_i32_2 : i32, i32, i32, i32
  }
  func.func @transform_2(%arg0: i32) -> (i32, i32) {
    %c0_i32 = arith.constant 0 : i32
    %c0_i32_0 = arith.constant 0 : i32
    %c0_i32_1 = arith.constant 0 : i32
    return %c0_i32, %c0_i32_0 : i32, i32
  }
  func.func @transform_3(%arg0: i32) -> (i32, i32) {
    %c0_i32 = arith.constant 0 : i32
    %c0_i32_0 = arith.constant 0 : i32
    return %arg0, %c0_i32 : i32, i32
  }
}

</mosaic_0001>

<bundles_post_ra>
// kernel: tpu_custom_call.1
= control target key start
LH: loop header
LB: loop body
LE: loop exit
PB: predicated region body
PF: predicated region fallthrough
CT: control target
= control target key end

     0   :  { %8 = vsyncpa [#allocation4], 0  ;;  %s4220_s0 = inlined_call_operand.hbm [shape: bf16[16,128], index: 0, kind: input, shape index: {}]   ;;  %s4221_s1 = inlined_call_operand.hbm [shape: bf16[8,3,128,128], index: 1, kind: input, shape index: {}]   ;;  %s4222_s2 = inlined_call_operand.hbm [shape: f32[8,128], index: 2, kind: input, shape index: {}]   ;;  %s4223_s3 = inlined_call_operand.hbm [shape: f32[16,128], index: 3, kind: output, shape index: {}]  }
   0x1   :  { %9 = vsyncpa [#allocation7], 0 }
   0x2   :  { %10 = vsyncpa [#allocation5], 0  ;;  %s28_s14 = sshll.u32 %s4221_s1, 4  ;;  %s3952_s15 = smov [#allocation6]   ;;  %s29_s14 = int_to_ptr.hbm [resolvable:$true] %s28_s14 }
   0x3   :  { %s30_s16 = sshll.u32 %s3952_s15, 4  ;;  %s15_s19 = sshll.u32 %s4220_s0, 4  ;;  %s31_s16 = int_to_ptr.vmem [resolvable:$true] %s30_s16  ;;  %s16_s19 = int_to_ptr.hbm [resolvable:$true] %s15_s19 }
   0x4   :  { %s3953_s20 = smov 64   ;;  %s3954_s21 = smov 4  }
   0x5   :  { %36 = dma.hbm_to_vmem [thread:$0]  %s29_s14, 24576, %s31_s16, [#allocation7], %s3953_s20, %s3953_s20, %s3954_s21  }
   0x6   :  { %s3955_s22 = smov [#allocation3]   ;;  %s42_s26 = sshll.u32 %s4222_s2, 4  ;;  %s43_s26 = int_to_ptr.hbm [resolvable:$true] %s42_s26 }
   0x7   :  { %s17_s23 = sshll.u32 %s3955_s22, 4  ;;  %s3956_s1 = smov [#allocation8]   ;;  %s18_s23 = int_to_ptr.vmem [resolvable:$true] %s17_s23 }
   0x8   :  { %23 = dma.hbm_to_vmem [thread:$0]  %s16_s19, 128, %s18_s23, [#allocation4], %s3953_s20, %s3953_s20, %s3954_s21  }
   0x9   :  { %s44_s27 = sshll.u32 %s3956_s1, 4  ;;  %s45_s27 = int_to_ptr.vmem [resolvable:$true] %s44_s27 }
   0xa   :  { %47 = dma.hbm_to_vmem [thread:$0]  %s43_s26, 128, %s45_s27, [#allocation7]  }
   0xb   :  { %3946 = dma.done.wait [#allocation4], 128  }
   0xc   :  { %3947 = vsyncadd [#allocation4], 4294967168 }
   0xd   :  { %3948 = dma.done.wait [#allocation7], 24704  }
   0xe   :  { %3949 = vsyncadd [#allocation7], 4294942592  ;;  %v3650_v0 = vld [vmem:[#allocation6 + $0x78] sm:$0xff]  ;;  %v3649_v3 = vld [vmem:[#allocation6 + $0x70] sm:$0xff]  ;;  %vm61_vm0 = vcmask 1040384   ;;  %vm100_vm5 = vcmask 1043456  }
   0xf   :  { %v3642_v1 = vld [vmem:[#allocation6 + $0x38] sm:$0xff]  ;;  %234 = vmatpush.bf16.msra.mxu0 %v3650_v0  ;;  %v3641_v4 = vld [vmem:[#allocation6 + $0x30] sm:$0xff]  ;;  %vm62_vm1 = vsmask.f32 256  ;;  %vm70_vm2 = vsmask.f32 7938 }
  0x10   :  { %v3658_v2 = vld [vmem:[#allocation6 + $0xb8] sm:$0xff]  ;;  %302 = vmatpush.bf16.msra.mxu1 %v3642_v1  ;;  %v3657_v5 = vld [vmem:[#allocation6 + $0xb0] sm:$0xff]  ;;  %vm3989_vm3 = vmand %vm61_vm0, %vm62_vm1  ;;  %vm134_vm7 = vsmask.f32 3328  ;;  %vm135_vm8 = vsmask.f32 7440 }
  0x11   :  { %402 = vmatpush.bf16.msra.mxu2 %v3658_v2  ;;  %v3648_v7 = vld [vmem:[#allocation6 + $0x68] sm:$0xff]  ;;  %vm3994_vm4 = vmand %vm61_vm0, %vm70_vm2  ;;  %v3647_v11 = vld [vmem:[#allocation6 + $0x60] sm:$0xff]  ;;  %vm322_vm9 = vcmask 1042432   ;;  %vm323_vm10 = vcmask 1046532   ;;  %s3957_s0 = smov [#allocation9]   ;;  %s2804_s30 = sshll.u32 %s4223_s3, 4  ;;  %s2805_s30 = int_to_ptr.hbm [resolvable:$true] %s2804_s30 }
  0x12   :  { %v3640_v8 = vld [vmem:[#allocation6 + $0x28] sm:$0xff]  ;;  %v67_v13 = vld [vmem:[#allocation2 + $0x8] sm:$0x1]  ;;  %v3639_v15 = vld [vmem:[#allocation6 + $0x20] sm:$0xff]  ;;  %s2802_s2 = sshll.u32 %s3957_s0, 4  ;;  %s3958_s4 = smov 128   ;;  %s2803_s2 = int_to_ptr.vmem [resolvable:$true] %s2802_s2 }
  0x13   :  { %235 = vmatpush.bf16.msra.mxu0 %v3649_v3  ;;  %v3656_v10 = vld [vmem:[#allocation6 + $0xa8] sm:$0xff]  ;;  %v68_v17 = vsel %vm3989_vm3, 0, %v67_v13  ;;  %v75_v19 = vld [vmem:[#allocation2 + $0xc] sm:$0x1]  ;;  %v3655_v20 = vld [vmem:[#allocation6 + $0xa0] sm:$0xff]  ;;  %s3959_s5 = smov 8  }
  0x14   :  { %303 = vmatpush.bf16.msra.mxu1 %v3641_v4  ;;  %v64_v12 = vld [vmem:[#allocation2] sm:$0x1]  ;;  %v72_v14 = vld [vmem:[#allocation2 + $0x4] sm:$0x1]  ;;  %v76_v21 = vsel %vm3994_vm4, 0, %v75_v19  ;;  %v3646_v28 = vld [vmem:[#allocation6 + $0x58] sm:$0xff] }
  0x15   :  { %403 = vmatpush.bf16.msra.mxu2 %v3657_v5  ;;  %v65_v16 = vsel %vm3989_vm3, 0, %v64_v12  ;;  %v73_v18 = vsel %vm3994_vm4, 0, %v72_v14  ;;  %v78_v22 = vld [vmem:[#allocation3] sm:$0xf]  ;;  %69 = vst [vmem:[#allocation2 + $0x8] sm:$0x1] %v68_v17  ;;  %vm4008_vm6 = vmand %vm100_vm5, %vm70_vm2 }
  0x16   :  { %66 = vst [vmem:[#allocation2] sm:$0x1] %v65_v16  ;;  %v79_v23 = vld [vmem:[#allocation3 + $0x4] sm:$0xf]  ;;  %v81_v24 = vshrl.u32 %v78_v22, 16  ;;  %v84_v25 = vshll.u32 %v78_v22, 16  ;;  %vm4026_vm11 = vmor %vm322_vm9, %vm323_vm10 }
  0x17   :  { %236 = vmatpush.bf16.msra.mxu0 %v3648_v7  ;;  %74 = vst [vmem:[#allocation2 + $0x4] sm:$0x1] %v73_v18  ;;  %v89_v26 = vshrl.u32 %v79_v23, 16  ;;  %v92_v27 = vshll.u32 %v79_v23, 16  ;;  %v3638_v31 = vld [vmem:[#allocation6 + $0x18] sm:$0xff]  ;;  %v3645_v39 = vld [vmem:[#allocation6 + $0x50] sm:$0xff]  ;;  %vm4032_vm12 = vmor %vm134_vm7, %vm135_vm8 }
  0x18   :  { %304 = vmatpush.bf16.msra.mxu1 %v3640_v8  ;;  %77 = vst [vmem:[#allocation2 + $0xc] sm:$0x1] %v76_v21  ;;  %v83_v29 = vrot.slane %v81_v24, 7  ;;  %v3654_v33 = vld [vmem:[#allocation6 + $0x98] sm:$0xff]  ;;  %v3637_v40 = vld [vmem:[#allocation6 + $0x10] sm:$0xff]  ;;  %v3644_v49 = vld [vmem:[#allocation6 + $0x48] sm:$0xff] }
  0x19   :  { %404 = vmatpush.bf16.msra.mxu2 %v3656_v10  ;;  %v91_v32 = vrot.slane %v89_v26, 7  ;;  %v3653_v43 = vld [vmem:[#allocation6 + $0x90] sm:$0xff]  ;;  %v3636_v50 = vld [vmem:[#allocation6 + $0x8] sm:$0xff]  ;;  %v3643_v52 = vld [vmem:[#allocation6 + $0x40] sm:$0xff] }
  0x1a   :  { %v86_v34 = vor.u32 %v84_v25, %v83_v29  ;;  %v87_v35 = vrot.slane %v83_v29, 4  ;;  %v3652_v51 = vld [vmem:[#allocation6 + $0x88] sm:$0xff]  ;;  %v3635_v53 = vld [vmem:[#allocation6] sm:$0xff] }
  0x1b   :  { %237 = vmatpush.bf16.msra.mxu0 %v3647_v11  ;;  %v94_v36 = vor.u32 %v92_v27, %v91_v32  ;;  %v95_v37 = vrot.slane %v91_v32, 4  ;;  %v3651_v54 = vld [vmem:[#allocation6 + $0x80] sm:$0xff] }
  0x1c   :  { %305 = vmatpush.bf16.msra.mxu1 %v3639_v15  ;;  %v108_v42 = vld [vmem:[#allocation2 + $0x8] sm:$0xf] }
  0x1d   :  { %405 = vmatpush.bf16.msra.mxu2 %v3655_v20  ;;  %v102_v38 = vld [vmem:[#allocation2] sm:$0xf]  ;;  %v109_v45 = vsel %vm4008_vm6, %v94_v36, %v108_v42  ;;  %v3683_v36 = vld [vmem:[#allocation6 + $0x178] sm:$0xff]  ;;  %v3674_v42 = vld [vmem:[#allocation6 + $0x130] sm:$0xff] }
  0x1e   :  { %v103_v41 = vsel %vm4008_vm6, %v86_v34, %v102_v38  ;;  %v105_v44 = vld [vmem:[#allocation2 + $0x4] sm:$0x1]  ;;  %110 = vst [vmem:[#allocation2 + $0x8] sm:$0xf] %v109_v45  ;;  %v3667_v34 = vld [vmem:[#allocation6 + $0xf8] sm:$0xff]  ;;  %v3682_v38 = vld [vmem:[#allocation6 + $0x170] sm:$0xff] }
  0x1f   :  { %238 = vmatpush.bf16.msra.mxu0 %v3646_v28  ;;  %104 = vst [vmem:[#allocation2] sm:$0xf] %v103_v41  ;;  %v106_v46 = vsel %vm3989_vm3, %v87_v35, %v105_v44  ;;  %v111_v47 = vld [vmem:[#allocation2 + $0xc] sm:$0x1]  ;;  %v3681_v41 = vld [vmem:[#allocation6 + $0x168] sm:$0xff]  ;;  %v3680_v44 = vld [vmem:[#allocation6 + $0x160] sm:$0xff] }
  0x20   :  { %306 = vmatpush.bf16.msra.mxu1 %v3638_v31  ;;  %107 = vst [vmem:[#allocation2 + $0x4] sm:$0x1] %v106_v46  ;;  %v112_v48 = vsel %vm3989_vm3, %v95_v37, %v111_v47  ;;  %v3666_v35 = vld [vmem:[#allocation6 + $0xf0] sm:$0xff]  ;;  %v3665_v37 = vld [vmem:[#allocation6 + $0xe8] sm:$0xff]  ;;  %v3679_v47 = vld [vmem:[#allocation6 + $0x158] sm:$0xff] }
  0x21   :  { %406 = vmatpush.bf16.msra.mxu2 %v3654_v33  ;;  %113 = vst [vmem:[#allocation2 + $0xc] sm:$0x1] %v112_v48  ;;  %v3673_v45 = vld [vmem:[#allocation6 + $0x128] sm:$0xff]  ;;  %v3662_v46 = vld [vmem:[#allocation6 + $0xd0] sm:$0xff]  ;;  %v3672_v48 = vld [vmem:[#allocation6 + $0x120] sm:$0xff] }
  0x23   :  { %239 = vmatpush.bf16.msra.mxu0 %v3645_v39  ;;  %v3675_v39 = vld [vmem:[#allocation6 + $0x138] sm:$0xff] }
  0x24   :  { %307 = vmatpush.bf16.msra.mxu1 %v3637_v40  ;;  %v3664_v40 = vld [vmem:[#allocation6 + $0xe0] sm:$0xff]  ;;  %575 = vmatpush.bf16.msra.mxu3 %v3675_v39 }
  0x25   :  { %407 = vmatpush.bf16.msra.mxu2 %v3653_v43  ;;  %v115_v58 = vld [vmem:[#allocation2 + $0x8] sm:$0xf]  ;;  %v3663_v43 = vld [vmem:[#allocation6 + $0xd8] sm:$0xff] }
  0x26   :  { %v4020_v55 = vld [vmem:[#allocation2] sm:$0xf]  ;;  %v3634_v61 = vld [vmem:[#allocation2 + $0x4] sm:$0xf0]  ;;  %v152_v63 = vshrl.u32 %v115_v58, 16  ;;  %v155_v0 = vshll.u32 %v115_v58, 16 }
  0x27   :  { %240 = vmatpush.bf16.msra.mxu0 %v3644_v49  ;;  %v2852_v56 = vld [vmem:[#allocation2] sm:$0xf]  ;;  %v138_v59 = vshrl.u32 %v4020_v55, 16  ;;  %v141_v60 = vshll.u32 %v4020_v55, 16  ;;  %v132_v62 = vld [vmem:[#allocation2 + $0x4] sm:$0x1] }
  0x28   :  { %308 = vmatpush.bf16.msra.mxu1 %v3636_v50  ;;  %v316_v57 = vld [vmem:[#allocation2] sm:$0xe]  ;;  %v2853_v1 = vor.u32 %v3634_v61, %v2852_v56  ;;  %v317_v2 = vld [vmem:[#allocation2 + $0x8] sm:$0xe]  ;;  %v133_v3 = vld [vmem:[#allocation2 + $0xc] sm:$0x1]  ;;  %576 = vmatpush.bf16.msra.mxu3 %v3674_v42 }
  0x29   :  { %408 = vmatpush.bf16.msra.mxu2 %v3652_v51  ;;  %v140_v4 = vrot.slane %v138_v59, 4  ;;  %v143_v5 = vrot.slane %v141_v60, 5  ;;  %v147_v7 = vshll.u32 %v132_v62, 16  ;;  %v2886_v9 = vrot.slane %v316_v57, 9  ;;  %v3661_v50 = vld [vmem:[#allocation6 + $0xc8] sm:$0xff]  ;;  %v3678_v51 = vld [vmem:[#allocation6 + $0x150] sm:$0xff] }
  0x2a   :  { %v154_v10 = vrot.slane %v152_v63, 4  ;;  %v157_v11 = vrot.slane %v155_v0, 5  ;;  %v161_v12 = vshll.u32 %v133_v3, 16  ;;  %v327_v13 = vrot.slane %v132_v62, 5  ;;  %v3660_v56 = vld [vmem:[#allocation6 + $0xc0] sm:$0xff]  ;;  %v3677_v58 = vld [vmem:[#allocation6 + $0x148] sm:$0xff] }
  0x2b   :  { %241 = vmatpush.bf16.msra.mxu0 %v3643_v52  ;;  %v144_v14 = vor.u32 %v143_v5, %v140_v4  ;;  %v149_v15 = vrot.slane %v147_v7, 5  ;;  %v2887_v16 = vrot.slane %v317_v2, 9  ;;  %v331_v17 = vrot.slane %v133_v3, 5  ;;  %v3842_v57 = vld [vmem:[#allocation8] ss:$0 sm:$0xff]  ;;  %v3670_v61 = vld [vmem:[#allocation6 + $0x110] sm:$0xff] }
  0x2c   :  { %309 = vmatpush.bf16.msra.mxu1 %v3635_v53  ;;  %v158_v19 = vor.u32 %v157_v11, %v154_v10  ;;  %v163_v20 = vrot.slane %v161_v12, 5  ;;  %v328_v21 = vsel %vm4026_vm11, %v2886_v9, %v327_v13  ;;  %577 = vmatpush.bf16.msra.mxu3 %v3673_v45  ;;  %v3671_v53 = vld [vmem:[#allocation6 + $0x118] sm:$0xff]  ;;  %v3676_v63 = vld [vmem:[#allocation6 + $0x140] sm:$0xff]  ;;  %v3669_v3 = vld [vmem:[#allocation6 + $0x108] sm:$0xff] }
  0x2d   :  { %409 = vmatpush.bf16.msra.mxu2 %v3651_v54  ;;  %v145_v22 = vrot.slane %v144_v14, 4  ;;  %v332_v23 = vsel %vm4026_vm11, %v2887_v16, %v331_v17  ;;  %v350_v24 = vunpack.c.l.b16 %v328_v21  ;;  %v3668_v11 = vld [vmem:[#allocation6 + $0x100] sm:$0xff] }
  0x2e   :  { %v159_v25 = vrot.slane %v158_v19, 4  ;;  %v351_v26 = vunpack.c.l.b16 %v332_v23 }
  0x2f   :  { %310 = vmatmul.bf16.vlgmr.msra.gmra.mxu1 %v2853_v1  ;;  %v150_v27 = vsel %vm4032_vm12, %v145_v22, %v149_v15  ;;  %643 = vmatpush.bf16.msrb.mxu0 %v3667_v34  ;;  %v448_v15 = vld [vmem:[#allocation2 + $0x4] sm:$0x1] }
  0x30   :  { %v164_v28 = vsel %vm4032_vm12, %v159_v25, %v163_v20  ;;  %v182_v29 = vunpack.c.l.b16 %v150_v27  ;;  %v352_v31 = vpack.c.b16 %v351_v26, %v350_v24  ;;  %740 = vmatpush.bf16.msrb.mxu1 %v3683_v36  ;;  %578 = vmatpush.bf16.msra.mxu3 %v3672_v48  ;;  %v451_v26 = vld [vmem:[#allocation2 + $0x8] sm:$0xf]  ;;  %v454_v27 = vld [vmem:[#allocation2 + $0xc] sm:$0x1] }
  0x31   :  { %v183_v32 = vunpack.c.l.b16 %v164_v28 }
  0x32   :  { %410 = vmatmul.bf16.vlgmr.msra.gmra.mxu2 %v352_v31 }
  0x33   :  { %v184_v33 = vpack.c.b16 %v183_v32, %v182_v29  ;;  %644 = vmatpush.bf16.msrb.mxu0 %v3666_v35 }
  0x34   :  { %741 = vmatpush.bf16.msrb.mxu1 %v3682_v38  ;;  %579 = vmatpush.bf16.msra.mxu3 %v3671_v53 }
  0x35   :  { %242 = vmatmul.bf16.vlgmr.msra.gmra.mxu0 %v184_v33 }
  0x37   :  { %645 = vmatpush.bf16.msrb.mxu0 %v3665_v37 }
  0x38   :  { %742 = vmatpush.bf16.msrb.mxu1 %v3681_v41  ;;  %580 = vmatpush.bf16.msra.mxu3 %v3670_v61 }
  0x3b   :  { %646 = vmatpush.bf16.msrb.mxu0 %v3664_v40 }
  0x3c   :  { %743 = vmatpush.bf16.msrb.mxu1 %v3680_v44  ;;  %581 = vmatpush.bf16.msra.mxu3 %v3669_v3 }
  0x3f   :  { %647 = vmatpush.bf16.msrb.mxu0 %v3663_v43 }
  0x40   :  { %744 = vmatpush.bf16.msrb.mxu1 %v3679_v47  ;;  %582 = vmatpush.bf16.msra.mxu3 %v3668_v11  ;;  %v3692_v11 = vld [vmem:[#allocation6 + $0x1b8] sm:$0xff] }
  0x43   :  { %648 = vmatpush.bf16.msrb.mxu0 %v3662_v46 }
  0x44   :  { %745 = vmatpush.bf16.msrb.mxu1 %v3678_v51  ;;  %981 = vmatpush.bf16.msrb.mxu3 %v3692_v11 }
  0x47   :  { %649 = vmatpush.bf16.msrb.mxu0 %v3661_v50 }
  0x48   :  { %746 = vmatpush.bf16.msrb.mxu1 %v3677_v58 }
  0x4b   :  { %650 = vmatpush.bf16.msrb.mxu0 %v3660_v56 }
  0x4c   :  { %747 = vmatpush.bf16.msrb.mxu1 %v3676_v63 }
  0xac   :  { %v311_v49 = vpop.f32.mrf.mxu1 }
  0xb2   :  { %v243_v52 = vpop.f32.mrf.mxu0 }
  0xb3   :  { %v312_v54 = vadd.f32 %v311_v49, %v243_v52 }
  0xb4   :  { %v313_v0 = vpop.f32.mrf.mxu1 }
  0xb5   :  { %v411_v59 = vpop.f32.mrf.mxu2 }
  0xb6   :  { %v416_v60 = vadd.f32 %v411_v59, %v312_v54 }
  0xb8   :  { %v420_v62 = vadd.f32 %v3842_v57, %v416_v60 }
  0xba   :  { %v4044_v1 = vmax.f32 %v420_v62, 0.0  ;;  %v245_v2 = vpop.f32.mrf.mxu0 }
  0xbb   :  { %v314_v5 = vadd.f32 %v313_v0, %v245_v2 }
  0xbc   :  { %v424_v4 = vpack.c.bf16 %v4044_v1, %v4044_v1 }
  0xbd   :  { %v413_v7 = vpop.f32.mrf.mxu2 }
  0xbe   :  { %v427_v9 = vshrl.u32 %v424_v4, 16  ;;  %v417_v10 = vadd.f32 %v413_v7, %v314_v5  ;;  %v430_v13 = vshll.u32 %v424_v4, 16 }
  0xc0   :  { %v429_v12 = vrot.slane %v427_v9, 7  ;;  %v421_v14 = vadd.f32 %v3842_v57, %v417_v10 }
  0xc2   :  { %v432_v16 = vor.u32 %v430_v13, %v429_v12  ;;  %v433_v17 = vrot.slane %v429_v12, 4  ;;  %v4048_v19 = vmax.f32 %v421_v14, 0.0  ;;  %v3691_v12 = vld [vmem:[#allocation6 + $0x1b0] sm:$0xff]  ;;  %v3708_v13 = vld [vmem:[#allocation6 + $0x238] sm:$0xff]  ;;  %v3690_v14 = vld [vmem:[#allocation6 + $0x1a8] sm:$0xff] }
  0xc3   :  { %982 = vmatpush.bf16.msrb.mxu3 %v3691_v12  ;;  %1078 = vmatpush.bf16.msra.mxu0 %v3708_v13 }
  0xc4   :  { %v446_v20 = vsel %vm4008_vm6, %v432_v16, %v4020_v55  ;;  %v449_v21 = vsel %vm3989_vm3, %v433_v17, %v448_v15  ;;  %v425_v22 = vpack.c.bf16 %v4048_v19, %v4048_v19  ;;  %v3707_v15 = vld [vmem:[#allocation6 + $0x230] sm:$0xff]  ;;  %v3700_v16 = vld [vmem:[#allocation6 + $0x1f8] sm:$0xff]  ;;  %v3689_v17 = vld [vmem:[#allocation6 + $0x1a0] sm:$0xff] }
  0xc5   :  { %447 = vst [vmem:[#allocation2] sm:$0xf] %v446_v20  ;;  %913 = vmatpush.bf16.msrb.mxu2 %v3700_v16  ;;  %v3706_v20 = vld [vmem:[#allocation6 + $0x228] sm:$0xff] }
  0xc6   :  { %450 = vst [vmem:[#allocation2 + $0x4] sm:$0x1] %v449_v21  ;;  %v435_v23 = vshrl.u32 %v425_v22, 16  ;;  %v438_v25 = vshll.u32 %v425_v22, 16  ;;  %v3699_v21 = vld [vmem:[#allocation6 + $0x1f0] sm:$0xff]  ;;  %v3688_v22 = vld [vmem:[#allocation6 + $0x198] sm:$0xff] }
  0xc7   :  { %983 = vmatpush.bf16.msrb.mxu3 %v3690_v14  ;;  %1079 = vmatpush.bf16.msra.mxu0 %v3707_v15 }
  0xc8   :  { %v437_v24 = vrot.slane %v435_v23, 7  ;;  %v3705_v23 = vld [vmem:[#allocation6 + $0x220] sm:$0xff] }
  0xc9   :  { %914 = vmatpush.bf16.msrb.mxu2 %v3699_v21 }
  0xca   :  { %v440_v28 = vor.u32 %v438_v25, %v437_v24  ;;  %v441_v29 = vrot.slane %v437_v24, 4  ;;  %v3698_v24 = vld [vmem:[#allocation6 + $0x1e8] sm:$0xff]  ;;  %v3687_v25 = vld [vmem:[#allocation6 + $0x190] sm:$0xff] }
  0xcb   :  { %984 = vmatpush.bf16.msrb.mxu3 %v3689_v17  ;;  %1080 = vmatpush.bf16.msra.mxu0 %v3706_v20 }
  0xcc   :  { %v452_v31 = vsel %vm4008_vm6, %v440_v28, %v451_v26  ;;  %v455_v55 = vsel %vm3989_vm3, %v441_v29, %v454_v27  ;;  %v4061_v32 = vld [vmem:[#allocation2] sm:$0xf]  ;;  %v3704_v26 = vld [vmem:[#allocation6 + $0x218] sm:$0xff]  ;;  %v3697_v27 = vld [vmem:[#allocation6 + $0x1e0] sm:$0xff] }
  0xcd   :  { %453 = vst [vmem:[#allocation2 + $0x8] sm:$0xf] %v452_v31  ;;  %v479_v33 = vshrl.u32 %v4061_v32, 16  ;;  %v482_v34 = vshll.u32 %v4061_v32, 16  ;;  %v476_v35 = vld [vmem:[#allocation2 + $0x4] sm:$0x1]  ;;  %915 = vmatpush.bf16.msrb.mxu2 %v3698_v24 }
  0xce   :  { %456 = vst [vmem:[#allocation2 + $0xc] sm:$0x1] %v455_v55  ;;  %v657_v36 = vld [vmem:[#allocation2] sm:$0xe]  ;;  %v665_v40 = vrot.slane %v476_v35, 5  ;;  %v488_v52 = vshll.u32 %v476_v35, 16 }
  0xcf   :  { %v481_v37 = vrot.slane %v479_v33, 4  ;;  %v484_v38 = vrot.slane %v482_v34, 5  ;;  %v2988_v39 = vrot.slane %v657_v36, 9  ;;  %v2954_v41 = vld [vmem:[#allocation2] sm:$0xf]  ;;  %985 = vmatpush.bf16.msrb.mxu3 %v3688_v22  ;;  %1081 = vmatpush.bf16.msra.mxu0 %v3705_v23  ;;  %v3703_v29 = vld [vmem:[#allocation6 + $0x210] sm:$0xff] }
  0xd0   :  { %v490_v62 = vrot.slane %v488_v52, 5  ;;  %v3686_v28 = vld [vmem:[#allocation6 + $0x188] sm:$0xff]  ;;  %v3696_v55 = vld [vmem:[#allocation6 + $0x1d8] sm:$0xff]  ;;  %v3685_v33 = vld [vmem:[#allocation6 + $0x180] sm:$0xff] }
  0xd1   :  { %v485_v45 = vor.u32 %v484_v38, %v481_v37  ;;  %v666_v50 = vsel %vm4026_vm11, %v2988_v39, %v665_v40  ;;  %916 = vmatpush.bf16.msrb.mxu2 %v3697_v27  ;;  %v3702_v36 = vld [vmem:[#allocation6 + $0x208] sm:$0xff]  ;;  %v3843_v38 = vld [vmem:[#allocation8 + $0x1] ss:$0 sm:$0xff]  ;;  %v3695_v39 = vld [vmem:[#allocation6 + $0x1d0] sm:$0xff] }
  0xd2   :  { %v688_v60 = vunpack.c.l.b16 %v666_v50  ;;  %v3693_v50 = vld [vmem:[#allocation6 + $0x1c0] sm:$0xff] }
  0xd3   :  { %v486_v57 = vrot.slane %v485_v45, 4  ;;  %986 = vmatpush.bf16.msrb.mxu3 %v3687_v25  ;;  %1082 = vmatpush.bf16.msra.mxu0 %v3704_v26 }
  0xd4   :  { %v3659_v42 = vld [vmem:[#allocation2 + $0x4] sm:$0xf0] }
  0xd5   :  { %v658_v43 = vld [vmem:[#allocation2 + $0x8] sm:$0xe]  ;;  %v2955_v46 = vor.u32 %v3659_v42, %v2954_v41  ;;  %v477_v47 = vld [vmem:[#allocation2 + $0xc] sm:$0x1]  ;;  %v491_v2 = vsel %vm4032_vm12, %v486_v57, %v490_v62  ;;  %917 = vmatpush.bf16.msrb.mxu2 %v3696_v55  ;;  %v3701_v42 = vld [vmem:[#allocation6 + $0x200] sm:$0xff] }
  0xd6   :  { %v458_v44 = vld [vmem:[#allocation2 + $0x8] sm:$0xf]  ;;  %v2989_v48 = vrot.slane %v658_v43, 9  ;;  %v669_v51 = vrot.slane %v477_v47, 5  ;;  %v502_v59 = vshll.u32 %v477_v47, 16  ;;  %v523_v7 = vunpack.c.l.b16 %v491_v2  ;;  %v3694_v43 = vld [vmem:[#allocation6 + $0x1c8] sm:$0xff] }
  0xd7   :  { %v493_v49 = vshrl.u32 %v458_v44, 16  ;;  %v496_v53 = vshll.u32 %v458_v44, 16  ;;  %651 = vmatmul.bf16.vlgmr.msrb.gmra.mxu0 %v2955_v46  ;;  %987 = vmatpush.bf16.msrb.mxu3 %v3686_v28 }
  0xd8   :  { %v670_v56 = vsel %vm4026_vm11, %v2989_v48, %v669_v51  ;;  %v504_v4 = vrot.slane %v502_v59, 5  ;;  %1083 = vmatpush.bf16.msra.mxu0 %v3703_v29 }
  0xd9   :  { %v495_v54 = vrot.slane %v493_v49, 4  ;;  %v498_v58 = vrot.slane %v496_v53, 5  ;;  %v689_v61 = vunpack.c.l.b16 %v670_v56  ;;  %918 = vmatpush.bf16.msrb.mxu2 %v3695_v39 }
  0xdb   :  { %v499_v63 = vor.u32 %v498_v58, %v495_v54  ;;  %v690_v0 = vpack.c.b16 %v689_v61, %v688_v60  ;;  %988 = vmatpush.bf16.msrb.mxu3 %v3685_v33  ;;  %v786_v60 = vld [vmem:[#allocation2 + $0x4] sm:$0x1] }
  0xdc   :  { %1084 = vmatpush.bf16.msra.mxu0 %v3702_v36 }
  0xdd   :  { %v500_v3 = vrot.slane %v499_v63, 4  ;;  %748 = vmatmul.bf16.vlgmr.msrb.gmra.mxu1 %v690_v0  ;;  %919 = vmatpush.bf16.msrb.mxu2 %v3694_v43 }
  0xdf   :  { %v505_v5 = vsel %vm4032_vm12, %v500_v3, %v504_v4 }
  0xe0   :  { %v524_v9 = vunpack.c.l.b16 %v505_v5  ;;  %1085 = vmatpush.bf16.msra.mxu0 %v3701_v42 }
  0xe1   :  { %920 = vmatpush.bf16.msrb.mxu2 %v3693_v50 }
  0xe2   :  { %v525_v10 = vpack.c.b16 %v524_v9, %v523_v7  ;;  %v789_v7 = vld [vmem:[#allocation2 + $0x8] sm:$0xf]  ;;  %v792_v9 = vld [vmem:[#allocation2 + $0xc] sm:$0x1] }
  0xe4   :  { %583 = vmatmul.bf16.vlgmr.msra.gmra.mxu3 %v525_v10 }
 0x154   :  { %v652_v31 = vpop.f32.mrf.mxu0 }
 0x15a   :  { %v749_v34 = vpop.f32.mrf.mxu1 }
 0x15c   :  { %v654_v45 = vpop.f32.mrf.mxu0 }
 0x162   :  { %v751_v49 = vpop.f32.mrf.mxu1 }
 0x167   :  { %v584_v35 = vpop.f32.mrf.mxu3 }
 0x168   :  { %v653_v37 = vadd.f32 %v652_v31, %v584_v35 }
 0x16a   :  { %v754_v40 = vadd.f32 %v749_v34, %v653_v37 }
 0x16c   :  { %v758_v41 = vadd.f32 %v3843_v38, %v754_v40 }
 0x16e   :  { %v760_v44 = vmax.f32 %v758_v41, 0.0 }
 0x16f   :  { %v586_v46 = vpop.f32.mrf.mxu3 }
 0x170   :  { %v762_v47 = vpack.c.bf16 %v760_v44, %v760_v44  ;;  %v655_v48 = vadd.f32 %v654_v45, %v586_v46 }
 0x172   :  { %v765_v51 = vshrl.u32 %v762_v47, 16  ;;  %v755_v52 = vadd.f32 %v751_v49, %v655_v48  ;;  %v768_v54 = vshll.u32 %v762_v47, 16 }
 0x174   :  { %v767_v53 = vrot.slane %v765_v51, 7  ;;  %v759_v56 = vadd.f32 %v3843_v38, %v755_v52 }
 0x176   :  { %v770_v57 = vor.u32 %v768_v54, %v767_v53  ;;  %v771_v58 = vrot.slane %v767_v53, 4  ;;  %v761_v59 = vmax.f32 %v759_v56, 0.0  ;;  %v3717_v53 = vld [vmem:[#allocation6 + $0x278] sm:$0xff]  ;;  %v3716_v54 = vld [vmem:[#allocation6 + $0x270] sm:$0xff] }
 0x177   :  { %1321 = vmatpush.bf16.msra.mxu2 %v3717_v53  ;;  %v3733_v56 = vld [vmem:[#allocation6 + $0x2f8] sm:$0xff] }
 0x178   :  { %v784_v61 = vsel %vm4008_vm6, %v770_v57, %v4061_v32  ;;  %v787_v62 = vsel %vm3989_vm3, %v771_v58, %v786_v60  ;;  %v763_v63 = vpack.c.bf16 %v761_v59, %v761_v59  ;;  %1418 = vmatpush.bf16.msra.mxu3 %v3733_v56  ;;  %v3715_v57 = vld [vmem:[#allocation6 + $0x268] sm:$0xff]  ;;  %v3732_v58 = vld [vmem:[#allocation6 + $0x2f0] sm:$0xff]  ;;  %v3725_v59 = vld [vmem:[#allocation6 + $0x2b8] sm:$0xff] }
 0x179   :  { %785 = vst [vmem:[#allocation2] sm:$0xf] %v784_v61  ;;  %v3714_v60 = vld [vmem:[#allocation6 + $0x260] sm:$0xff]  ;;  %1253 = vmatpush.bf16.msra.mxu1 %v3725_v59  ;;  %v3731_v61 = vld [vmem:[#allocation6 + $0x2e8] sm:$0xff] }
 0x17a   :  { %788 = vst [vmem:[#allocation2 + $0x4] sm:$0x1] %v787_v62  ;;  %v773_v0 = vshrl.u32 %v763_v63, 16  ;;  %v776_v3 = vshll.u32 %v763_v63, 16  ;;  %v3724_v62 = vld [vmem:[#allocation6 + $0x2b0] sm:$0xff]  ;;  %v3713_v63 = vld [vmem:[#allocation6 + $0x258] sm:$0xff] }
 0x17b   :  { %1322 = vmatpush.bf16.msra.mxu2 %v3716_v54 }
 0x17c   :  { %v775_v2 = vrot.slane %v773_v0, 7  ;;  %1419 = vmatpush.bf16.msra.mxu3 %v3732_v58  ;;  %v3730_v0 = vld [vmem:[#allocation6 + $0x2e0] sm:$0xff] }
 0x17d   :  { %1254 = vmatpush.bf16.msra.mxu1 %v3724_v62 }
 0x17e   :  { %v778_v4 = vor.u32 %v776_v3, %v775_v2  ;;  %v779_v5 = vrot.slane %v775_v2, 4  ;;  %v3723_v2 = vld [vmem:[#allocation6 + $0x2a8] sm:$0xff]  ;;  %v3712_v3 = vld [vmem:[#allocation6 + $0x250] sm:$0xff] }
 0x17f   :  { %1323 = vmatpush.bf16.msra.mxu2 %v3715_v57 }
 0x180   :  { %v790_v10 = vsel %vm4008_vm6, %v778_v4, %v789_v7  ;;  %v793_v11 = vsel %vm3989_vm3, %v779_v5, %v792_v9  ;;  %v4082_v32 = vld [vmem:[#allocation2] sm:$0xf]  ;;  %1420 = vmatpush.bf16.msra.mxu3 %v3731_v61  ;;  %v3729_v4 = vld [vmem:[#allocation6 + $0x2d8] sm:$0xff]  ;;  %v3722_v5 = vld [vmem:[#allocation6 + $0x2a0] sm:$0xff] }
 0x181   :  { %794 = vst [vmem:[#allocation2 + $0xc] sm:$0x1] %v793_v11  ;;  %v995_v12 = vld [vmem:[#allocation2] sm:$0xe]  ;;  %v817_v13 = vshrl.u32 %v4082_v32, 16  ;;  %v820_v15 = vshll.u32 %v4082_v32, 16  ;;  %1255 = vmatpush.bf16.msra.mxu1 %v3723_v2 }
 0x182   :  { %791 = vst [vmem:[#allocation2 + $0x8] sm:$0xf] %v790_v10  ;;  %v814_v14 = vld [vmem:[#allocation2 + $0x4] sm:$0x1]  ;;  %v3090_v20 = vrot.slane %v995_v12, 9  ;;  %v3728_v9 = vld [vmem:[#allocation6 + $0x2d0] sm:$0xff] }
 0x183   :  { %v819_v16 = vrot.slane %v817_v13, 4  ;;  %v822_v17 = vrot.slane %v820_v15, 5  ;;  %v1003_v21 = vrot.slane %v814_v14, 5  ;;  %v3056_v22 = vld [vmem:[#allocation2] sm:$0xf]  ;;  %v826_v33 = vshll.u32 %v814_v14, 16  ;;  %1324 = vmatpush.bf16.msra.mxu2 %v3714_v60 }
 0x184   :  { %1421 = vmatpush.bf16.msra.mxu3 %v3730_v0  ;;  %v3711_v7 = vld [vmem:[#allocation6 + $0x248] sm:$0xff]  ;;  %v3721_v11 = vld [vmem:[#allocation6 + $0x298] sm:$0xff]  ;;  %v3710_v14 = vld [vmem:[#allocation6 + $0x240] sm:$0xff] }
 0x185   :  { %v823_v24 = vor.u32 %v822_v17, %v819_v16  ;;  %v1004_v27 = vsel %vm4026_vm11, %v3090_v20, %v1003_v21  ;;  %v828_v44 = vrot.slane %v826_v33, 5  ;;  %1256 = vmatpush.bf16.msra.mxu1 %v3722_v5  ;;  %v3844_v16 = vld [vmem:[#allocation8 + $0x2] ss:$0 sm:$0xff]  ;;  %v3727_v17 = vld [vmem:[#allocation6 + $0x2c8] sm:$0xff]  ;;  %v3720_v21 = vld [vmem:[#allocation6 + $0x290] sm:$0xff] }
 0x186   :  { %v1026_v37 = vunpack.c.l.b16 %v1004_v27 }
 0x187   :  { %v824_v38 = vrot.slane %v823_v24, 4  ;;  %1325 = vmatpush.bf16.msra.mxu2 %v3713_v63  ;;  %v3726_v24 = vld [vmem:[#allocation6 + $0x2c0] sm:$0xff] }
 0x188   :  { %v815_v23 = vld [vmem:[#allocation2 + $0xc] sm:$0x1]  ;;  %1422 = vmatpush.bf16.msra.mxu3 %v3729_v4 }
 0x189   :  { %v3684_v25 = vld [vmem:[#allocation2 + $0x4] sm:$0xf0]  ;;  %v1007_v28 = vrot.slane %v815_v23, 5  ;;  %v840_v42 = vshll.u32 %v815_v23, 16  ;;  %v829_v46 = vsel %vm4032_vm12, %v824_v38, %v828_v44  ;;  %1257 = vmatpush.bf16.msra.mxu1 %v3721_v11 }
 0x18a   :  { %v996_v26 = vld [vmem:[#allocation2 + $0x8] sm:$0xe]  ;;  %v3057_v29 = vor.u32 %v3684_v25, %v3056_v22  ;;  %v861_v50 = vunpack.c.l.b16 %v829_v46  ;;  %v3719_v25 = vld [vmem:[#allocation6 + $0x288] sm:$0xff] }
 0x18b   :  { %v3091_v31 = vrot.slane %v996_v26, 9  ;;  %v796_v55 = vld [vmem:[#allocation2 + $0x8] sm:$0xf]  ;;  %v842_v48 = vrot.slane %v840_v42, 5  ;;  %1326 = vmatpush.bf16.msra.mxu2 %v3712_v3  ;;  %v1126_v42 = vld [vmem:[#allocation2 + $0x4] sm:$0x1] }
 0x18c   :  { %v831_v34 = vshrl.u32 %v796_v55, 16  ;;  %v834_v35 = vshll.u32 %v796_v55, 16  ;;  %989 = vmatmul.bf16.vlgmr.msrb.gmra.mxu3 %v3057_v29 }
 0x18d   :  { %v1008_v36 = vsel %vm4026_vm11, %v3091_v31, %v1007_v28  ;;  %1423 = vmatpush.bf16.msra.mxu3 %v3728_v9  ;;  %1258 = vmatpush.bf16.msra.mxu1 %v3720_v21 }
 0x18e   :  { %v1027_v39 = vunpack.c.l.b16 %v1008_v36  ;;  %v833_v40 = vrot.slane %v831_v34, 4  ;;  %v836_v41 = vrot.slane %v834_v35, 5  ;;  %v3718_v34 = vld [vmem:[#allocation6 + $0x280] sm:$0xff] }
 0x18f   :  { %1327 = vmatpush.bf16.msra.mxu2 %v3711_v7 }
 0x190   :  { %v1028_v43 = vpack.c.b16 %v1027_v39, %v1026_v37  ;;  %v837_v45 = vor.u32 %v836_v41, %v833_v40 }
 0x191   :  { %1424 = vmatpush.bf16.msra.mxu3 %v3727_v17  ;;  %1259 = vmatpush.bf16.msra.mxu1 %v3719_v25 }
 0x192   :  { %1086 = vmatmul.bf16.vlgmr.msra.gmra.mxu0 %v1028_v43  ;;  %v838_v47 = vrot.slane %v837_v45, 4 }
 0x193   :  { %1328 = vmatpush.bf16.msra.mxu2 %v3710_v14 }
 0x194   :  { %v843_v49 = vsel %vm4032_vm12, %v838_v47, %v842_v48 }
 0x195   :  { %v862_v51 = vunpack.c.l.b16 %v843_v49  ;;  %1425 = vmatpush.bf16.msra.mxu3 %v3726_v24  ;;  %1260 = vmatpush.bf16.msra.mxu1 %v3718_v34 }
 0x197   :  { %v863_v52 = vpack.c.b16 %v862_v51, %v861_v50  ;;  %v1129_v50 = vld [vmem:[#allocation2 + $0x8] sm:$0xf]  ;;  %v1132_v51 = vld [vmem:[#allocation2 + $0xc] sm:$0x1] }
 0x199   :  { %921 = vmatmul.bf16.vlgmr.msrb.gmra.mxu2 %v863_v52 }
 0x20f   :  { %v990_v10 = vpop.f32.mrf.mxu3  ;;  %v1087_v12 = vpop.f32.mrf.mxu0 }
 0x217   :  { %v992_v26 = vpop.f32.mrf.mxu3  ;;  %v1089_v31 = vpop.f32.mrf.mxu0 }
 0x21c   :  { %v922_v13 = vpop.f32.mrf.mxu2 }
 0x21d   :  { %v991_v15 = vadd.f32 %v990_v10, %v922_v13 }
 0x21f   :  { %v1092_v20 = vadd.f32 %v1087_v12, %v991_v15 }
 0x221   :  { %v1096_v22 = vadd.f32 %v3844_v16, %v1092_v20 }
 0x223   :  { %v1098_v23 = vadd.f32 %v1096_v22, %v4044_v1 }
 0x224   :  { %v924_v27 = vpop.f32.mrf.mxu2 }
 0x225   :  { %v4095_v28 = vmax.f32 %v1098_v23, 0.0  ;;  %v993_v29 = vadd.f32 %v992_v26, %v924_v27 }
 0x227   :  { %v1102_v55 = vpack.c.bf16 %v4095_v28, %v4095_v28  ;;  %v1093_v33 = vadd.f32 %v1089_v31, %v993_v29 }
 0x229   :  { %v1105_v35 = vshrl.u32 %v1102_v55, 16  ;;  %v1097_v36 = vadd.f32 %v3844_v16, %v1093_v33  ;;  %v1108_v1 = vshll.u32 %v1102_v55, 16 }
 0x22b   :  { %v1107_v37 = vrot.slane %v1105_v35, 7  ;;  %v1099_v38 = vadd.f32 %v1097_v36, %v4048_v19  ;;  %v3742_v36 = vld [vmem:[#allocation6 + $0x338] sm:$0xff] }
 0x22c   :  { %1659 = vmatpush.bf16.msrb.mxu1 %v3742_v36 }
 0x22d   :  { %v1110_v39 = vor.u32 %v1108_v1, %v1107_v37  ;;  %v1111_v40 = vrot.slane %v1107_v37, 4  ;;  %v4100_v41 = vmax.f32 %v1099_v38, 0.0  ;;  %v3741_v37 = vld [vmem:[#allocation6 + $0x330] sm:$0xff]  ;;  %v3758_v1 = vld [vmem:[#allocation6 + $0x3b8] sm:$0xff]  ;;  %v3740_v38 = vld [vmem:[#allocation6 + $0x328] sm:$0xff] }
 0x22e   :  { %1756 = vmatpush.bf16.msrb.mxu2 %v3758_v1 }
 0x22f   :  { %v1124_v43 = vsel %vm4008_vm6, %v1110_v39, %v4082_v32  ;;  %v1127_v44 = vsel %vm3989_vm3, %v1111_v40, %v1126_v42  ;;  %v1103_v45 = vpack.c.bf16 %v4100_v41, %v4100_v41  ;;  %v3757_v39 = vld [vmem:[#allocation6 + $0x3b0] sm:$0xff]  ;;  %v3750_v40 = vld [vmem:[#allocation6 + $0x378] sm:$0xff]  ;;  %v3739_v42 = vld [vmem:[#allocation6 + $0x320] sm:$0xff] }
 0x230   :  { %1128 = vst [vmem:[#allocation2 + $0x4] sm:$0x1] %v1127_v44  ;;  %1660 = vmatpush.bf16.msrb.mxu1 %v3741_v37  ;;  %1591 = vmatpush.bf16.msrb.mxu0 %v3750_v40  ;;  %v3749_v44 = vld [vmem:[#allocation6 + $0x370] sm:$0xff] }
 0x231   :  { %1125 = vst [vmem:[#allocation2] sm:$0xf] %v1124_v43  ;;  %v1113_v46 = vshrl.u32 %v1103_v45, 16  ;;  %v1116_v47 = vshll.u32 %v1103_v45, 16  ;;  %v3756_v43 = vld [vmem:[#allocation6 + $0x3a8] sm:$0xff]  ;;  %v3738_v45 = vld [vmem:[#allocation6 + $0x318] sm:$0xff] }
 0x232   :  { %1757 = vmatpush.bf16.msrb.mxu2 %v3757_v39 }
 0x233   :  { %v1115_v19 = vrot.slane %v1113_v46, 7  ;;  %v3755_v46 = vld [vmem:[#allocation6 + $0x3a0] sm:$0xff] }
 0x234   :  { %1661 = vmatpush.bf16.msrb.mxu1 %v3740_v38  ;;  %1592 = vmatpush.bf16.msrb.mxu0 %v3749_v44 }
 0x235   :  { %v1118_v48 = vor.u32 %v1116_v47, %v1115_v19  ;;  %v1119_v49 = vrot.slane %v1115_v19, 4  ;;  %v3748_v19 = vld [vmem:[#allocation6 + $0x368] sm:$0xff]  ;;  %v3737_v47 = vld [vmem:[#allocation6 + $0x310] sm:$0xff] }
 0x236   :  { %1758 = vmatpush.bf16.msrb.mxu2 %v3756_v43 }
 0x237   :  { %v1130_v52 = vsel %vm4008_vm6, %v1118_v48, %v1129_v50  ;;  %v1133_v32 = vsel %vm3989_vm3, %v1119_v49, %v1132_v51  ;;  %v1154_v53 = vld [vmem:[#allocation2 + $0x4] sm:$0x1]  ;;  %v3754_v48 = vld [vmem:[#allocation6 + $0x398] sm:$0xff]  ;;  %v3747_v49 = vld [vmem:[#allocation6 + $0x360] sm:$0xff] }
 0x238   :  { %1134 = vst [vmem:[#allocation2 + $0xc] sm:$0x1] %v1133_v32  ;;  %v1335_v54 = vld [vmem:[#allocation2] sm:$0xe]  ;;  %v1343_v60 = vrot.slane %v1154_v53, 5  ;;  %v1166_v12 = vshll.u32 %v1154_v53, 16  ;;  %1662 = vmatpush.bf16.msrb.mxu1 %v3739_v42  ;;  %1593 = vmatpush.bf16.msrb.mxu0 %v3748_v19 }
 0x239   :  { %1131 = vst [vmem:[#allocation2 + $0x8] sm:$0xf] %v1130_v52  ;;  %v4113_v56 = vld [vmem:[#allocation2] sm:$0xf]  ;;  %v3192_v59 = vrot.slane %v1335_v54, 9  ;;  %v3753_v51 = vld [vmem:[#allocation6 + $0x390] sm:$0xff] }
 0x23a   :  { %v1157_v57 = vshrl.u32 %v4113_v56, 16  ;;  %v1160_v58 = vshll.u32 %v4113_v56, 16  ;;  %v3158_v63 = vld [vmem:[#allocation2] sm:$0xf]  ;;  %v1168_v25 = vrot.slane %v1166_v12, 5  ;;  %1759 = vmatpush.bf16.msrb.mxu2 %v3755_v46  ;;  %v3746_v52 = vld [vmem:[#allocation6 + $0x358] sm:$0xff] }
 0x23b   :  { %v1344_v5 = vsel %vm4026_vm11, %v3192_v59, %v1343_v60  ;;  %v3736_v50 = vld [vmem:[#allocation6 + $0x308] sm:$0xff]  ;;  %v3735_v53 = vld [vmem:[#allocation6 + $0x300] sm:$0xff] }
 0x23c   :  { %v1159_v61 = vrot.slane %v1157_v57, 4  ;;  %v1162_v62 = vrot.slane %v1160_v58, 5  ;;  %v1366_v16 = vunpack.c.l.b16 %v1344_v5  ;;  %1663 = vmatpush.bf16.msrb.mxu1 %v3738_v45  ;;  %1594 = vmatpush.bf16.msrb.mxu0 %v3747_v49  ;;  %v3752_v54 = vld [vmem:[#allocation6 + $0x388] sm:$0xff]  ;;  %v3845_v60 = vld [vmem:[#allocation8 + $0x3] ss:$0 sm:$0xff] }
 0x23e   :  { %v1163_v2 = vor.u32 %v1162_v62, %v1159_v61  ;;  %1760 = vmatpush.bf16.msrb.mxu2 %v3754_v48  ;;  %v3745_v61 = vld [vmem:[#allocation6 + $0x350] sm:$0xff] }
 0x23f   :  { %v1155_v0 = vld [vmem:[#allocation2 + $0xc] sm:$0x1] }
 0x240   :  { %v3709_v3 = vld [vmem:[#allocation2 + $0x4] sm:$0xf0]  ;;  %v1347_v7 = vrot.slane %v1155_v0, 5  ;;  %v1164_v17 = vrot.slane %v1163_v2, 4  ;;  %v1180_v23 = vshll.u32 %v1155_v0, 16  ;;  %1664 = vmatpush.bf16.msrb.mxu1 %v3737_v47  ;;  %1595 = vmatpush.bf16.msrb.mxu0 %v3746_v52  ;;  %v3744_v2 = vld [vmem:[#allocation6 + $0x348] sm:$0xff] }
 0x241   :  { %v1336_v4 = vld [vmem:[#allocation2 + $0x8] sm:$0xe]  ;;  %v3159_v9 = vor.u32 %v3709_v3, %v3158_v63  ;;  %v3751_v63 = vld [vmem:[#allocation6 + $0x380] sm:$0xff] }
 0x242   :  { %v3193_v10 = vrot.slane %v1336_v4, 9  ;;  %v1136_v11 = vld [vmem:[#allocation2 + $0x8] sm:$0xf]  ;;  %v1169_v27 = vsel %vm4032_vm12, %v1164_v17, %v1168_v25  ;;  %v1182_v31 = vrot.slane %v1180_v23, 5  ;;  %1761 = vmatpush.bf16.msrb.mxu2 %v3753_v51 }
 0x243   :  { %v1171_v13 = vshrl.u32 %v1136_v11, 16  ;;  %v1174_v14 = vshll.u32 %v1136_v11, 16  ;;  %1329 = vmatmul.bf16.vlgmr.msra.gmra.mxu2 %v3159_v9  ;;  %v1201_v33 = vunpack.c.l.b16 %v1169_v27  ;;  %v3743_v11 = vld [vmem:[#allocation6 + $0x340] sm:$0xff] }
 0x244   :  { %v1348_v15 = vsel %vm4026_vm11, %v3193_v10, %v1347_v7  ;;  %1665 = vmatpush.bf16.msrb.mxu1 %v3736_v50  ;;  %1596 = vmatpush.bf16.msrb.mxu0 %v3745_v61 }
 0x245   :  { %v1367_v20 = vunpack.c.l.b16 %v1348_v15  ;;  %v1173_v21 = vrot.slane %v1171_v13, 4  ;;  %v1176_v22 = vrot.slane %v1174_v14, 5 }
 0x246   :  { %1762 = vmatpush.bf16.msrb.mxu2 %v3752_v54 }
 0x247   :  { %v1368_v24 = vpack.c.b16 %v1367_v20, %v1366_v16  ;;  %v1177_v26 = vor.u32 %v1176_v22, %v1173_v21  ;;  %v1464_v22 = vld [vmem:[#allocation2 + $0x4] sm:$0x1] }
 0x248   :  { %1666 = vmatpush.bf16.msrb.mxu1 %v3735_v53  ;;  %1597 = vmatpush.bf16.msrb.mxu0 %v3744_v2 }
 0x249   :  { %1426 = vmatmul.bf16.vlgmr.msra.gmra.mxu3 %v1368_v24  ;;  %v1178_v29 = vrot.slane %v1177_v26, 4 }
 0x24a   :  { %1763 = vmatpush.bf16.msrb.mxu2 %v3751_v63 }
 0x24b   :  { %v1183_v55 = vsel %vm4032_vm12, %v1178_v29, %v1182_v31 }
 0x24c   :  { %v1202_v34 = vunpack.c.l.b16 %v1183_v55  ;;  %1598 = vmatpush.bf16.msrb.mxu0 %v3743_v11 }
 0x24e   :  { %v1203_v35 = vpack.c.b16 %v1202_v34, %v1201_v33  ;;  %v1467_v33 = vld [vmem:[#allocation2 + $0x8] sm:$0xf]  ;;  %v1470_v34 = vld [vmem:[#allocation2 + $0xc] sm:$0x1] }
 0x250   :  { %1261 = vmatmul.bf16.vlgmr.msra.gmra.mxu1 %v1203_v35 }
 0x2c6   :  { %v1330_v32 = vpop.f32.mrf.mxu2 }
 0x2cc   :  { %v1427_v58 = vpop.f32.mrf.mxu3 }
 0x2cd   :  { %v1262_v57 = vpop.f32.mrf.mxu1 }
 0x2ce   :  { %v1331_v59 = vadd.f32 %v1330_v32, %v1262_v57  ;;  %v1332_v4 = vpop.f32.mrf.mxu2 }
 0x2d0   :  { %v1432_v62 = vadd.f32 %v1427_v58, %v1331_v59 }
 0x2d2   :  { %v1436_v0 = vadd.f32 %v3845_v60, %v1432_v62 }
 0x2d4   :  { %v1438_v3 = vmax.f32 %v1436_v0, 0.0  ;;  %v1429_v10 = vpop.f32.mrf.mxu3 }
 0x2d5   :  { %v1264_v5 = vpop.f32.mrf.mxu1 }
 0x2d6   :  { %v1440_v7 = vpack.c.bf16 %v1438_v3, %v1438_v3  ;;  %v1333_v9 = vadd.f32 %v1332_v4, %v1264_v5 }
 0x2d8   :  { %v1443_v12 = vshrl.u32 %v1440_v7, 16  ;;  %v1433_v13 = vadd.f32 %v1429_v10, %v1333_v9  ;;  %v1446_v15 = vshll.u32 %v1440_v7, 16 }
 0x2da   :  { %v1445_v14 = vrot.slane %v1443_v12, 7  ;;  %v1437_v16 = vadd.f32 %v3845_v60, %v1433_v13 }
 0x2dc   :  { %v1448_v17 = vor.u32 %v1446_v15, %v1445_v14  ;;  %v1449_v20 = vrot.slane %v1445_v14, 4  ;;  %v1439_v21 = vmax.f32 %v1437_v16, 0.0  ;;  %v3767_v14 = vld [vmem:[#allocation6 + $0x3f8] sm:$0xff]  ;;  %v3766_v15 = vld [vmem:[#allocation6 + $0x3f0] sm:$0xff] }
 0x2dd   :  { %1999 = vmatpush.bf16.msra.mxu0 %v3767_v14  ;;  %v3783_v16 = vld [vmem:[#allocation6 + $0x478] sm:$0xff] }
 0x2de   :  { %v1462_v23 = vsel %vm4008_vm6, %v1448_v17, %v4113_v56  ;;  %v1465_v24 = vsel %vm3989_vm3, %v1449_v20, %v1464_v22  ;;  %v1441_v25 = vpack.c.bf16 %v1439_v21, %v1439_v21  ;;  %2096 = vmatpush.bf16.msra.mxu1 %v3783_v16  ;;  %v3765_v17 = vld [vmem:[#allocation6 + $0x3e8] sm:$0xff]  ;;  %v3782_v20 = vld [vmem:[#allocation6 + $0x470] sm:$0xff]  ;;  %v3775_v21 = vld [vmem:[#allocation6 + $0x438] sm:$0xff] }
 0x2df   :  { %1463 = vst [vmem:[#allocation2] sm:$0xf] %v1462_v23  ;;  %v3764_v22 = vld [vmem:[#allocation6 + $0x3e0] sm:$0xff]  ;;  %1931 = vmatpush.bf16.msrb.mxu3 %v3775_v21  ;;  %v3781_v23 = vld [vmem:[#allocation6 + $0x468] sm:$0xff] }
 0x2e0   :  { %1466 = vst [vmem:[#allocation2 + $0x4] sm:$0x1] %v1465_v24  ;;  %v1451_v26 = vshrl.u32 %v1441_v25, 16  ;;  %v1454_v29 = vshll.u32 %v1441_v25, 16  ;;  %v3774_v24 = vld [vmem:[#allocation6 + $0x430] sm:$0xff]  ;;  %v3763_v25 = vld [vmem:[#allocation6 + $0x3d8] sm:$0xff] }
 0x2e1   :  { %2000 = vmatpush.bf16.msra.mxu0 %v3766_v15 }
 0x2e2   :  { %v1453_v27 = vrot.slane %v1451_v26, 7  ;;  %2097 = vmatpush.bf16.msra.mxu1 %v3782_v20  ;;  %v3780_v26 = vld [vmem:[#allocation6 + $0x460] sm:$0xff] }
 0x2e3   :  { %1932 = vmatpush.bf16.msrb.mxu3 %v3774_v24 }
 0x2e4   :  { %v1456_v31 = vor.u32 %v1454_v29, %v1453_v27  ;;  %v1457_v55 = vrot.slane %v1453_v27, 4  ;;  %v3773_v27 = vld [vmem:[#allocation6 + $0x428] sm:$0xff]  ;;  %v3762_v29 = vld [vmem:[#allocation6 + $0x3d0] sm:$0xff] }
 0x2e5   :  { %2001 = vmatpush.bf16.msra.mxu0 %v3765_v17 }
 0x2e6   :  { %v1468_v35 = vsel %vm4008_vm6, %v1456_v31, %v1467_v33  ;;  %v1471_v36 = vsel %vm3989_vm3, %v1457_v55, %v1470_v34  ;;  %v4134_v56 = vld [vmem:[#allocation2] sm:$0xf]  ;;  %2098 = vmatpush.bf16.msra.mxu1 %v3781_v23  ;;  %v3779_v31 = vld [vmem:[#allocation6 + $0x458] sm:$0xff]  ;;  %v3772_v55 = vld [vmem:[#allocation6 + $0x420] sm:$0xff] }
 0x2e7   :  { %1469 = vst [vmem:[#allocation2 + $0x8] sm:$0xf] %v1468_v35  ;;  %v1495_v37 = vshrl.u32 %v4134_v56, 16  ;;  %v1498_v1 = vshll.u32 %v4134_v56, 16  ;;  %v1492_v38 = vld [vmem:[#allocation2 + $0x4] sm:$0x1]  ;;  %1933 = vmatpush.bf16.msrb.mxu3 %v3773_v27 }
 0x2e8   :  { %1472 = vst [vmem:[#allocation2 + $0xc] sm:$0x1] %v1471_v36  ;;  %v1673_v39 = vld [vmem:[#allocation2] sm:$0xe]  ;;  %v1681_v44 = vrot.slane %v1492_v38, 5  ;;  %v1504_v54 = vshll.u32 %v1492_v38, 16 }
 0x2e9   :  { %v1497_v40 = vrot.slane %v1495_v37, 4  ;;  %v1500_v42 = vrot.slane %v1498_v1, 5  ;;  %v3294_v43 = vrot.slane %v1673_v39, 9  ;;  %v3260_v45 = vld [vmem:[#allocation2] sm:$0xf]  ;;  %2002 = vmatpush.bf16.msra.mxu0 %v3764_v22  ;;  %v3778_v35 = vld [vmem:[#allocation6 + $0x450] sm:$0xff] }
 0x2ea   :  { %v1506_v2 = vrot.slane %v1504_v54, 5  ;;  %2099 = vmatpush.bf16.msra.mxu1 %v3780_v26  ;;  %v3761_v33 = vld [vmem:[#allocation6 + $0x3c8] sm:$0xff]  ;;  %v3771_v1 = vld [vmem:[#allocation6 + $0x418] sm:$0xff]  ;;  %v3846_v39 = vld [vmem:[#allocation8 + $0x4] ss:$0 sm:$0xff] }
 0x2eb   :  { %v1501_v48 = vor.u32 %v1500_v42, %v1497_v40  ;;  %v1682_v32 = vsel %vm4026_vm11, %v3294_v43, %v1681_v44  ;;  %1934 = vmatpush.bf16.msrb.mxu3 %v3772_v55  ;;  %v3760_v40 = vld [vmem:[#allocation6 + $0x3c0] sm:$0xff]  ;;  %v3777_v42 = vld [vmem:[#allocation6 + $0x448] sm:$0xff]  ;;  %v3770_v44 = vld [vmem:[#allocation6 + $0x410] sm:$0xff] }
 0x2ec   :  { %v1704_v63 = vunpack.c.l.b16 %v1682_v32  ;;  %v3768_v54 = vld [vmem:[#allocation6 + $0x400] sm:$0xff] }
 0x2ed   :  { %v1502_v60 = vrot.slane %v1501_v48, 4  ;;  %2003 = vmatpush.bf16.msra.mxu0 %v3763_v25 }
 0x2ee   :  { %v3734_v46 = vld [vmem:[#allocation2 + $0x4] sm:$0xf0]  ;;  %2100 = vmatpush.bf16.msra.mxu1 %v3779_v31 }
 0x2ef   :  { %v1674_v19 = vld [vmem:[#allocation2 + $0x8] sm:$0xe]  ;;  %v3261_v49 = vor.u32 %v3734_v46, %v3260_v45  ;;  %v1493_v50 = vld [vmem:[#allocation2 + $0xc] sm:$0x1]  ;;  %v1507_v5 = vsel %vm4032_vm12, %v1502_v60, %v1506_v2  ;;  %1935 = vmatpush.bf16.msrb.mxu3 %v3771_v1  ;;  %v3776_v46 = vld [vmem:[#allocation6 + $0x440] sm:$0xff] }
 0x2f0   :  { %v1474_v47 = vld [vmem:[#allocation2 + $0x8] sm:$0xf]  ;;  %v3295_v51 = vrot.slane %v1674_v19, 9  ;;  %v1685_v53 = vrot.slane %v1493_v50, 5  ;;  %v1518_v62 = vshll.u32 %v1493_v50, 16  ;;  %v1539_v11 = vunpack.c.l.b16 %v1507_v5 }
 0x2f1   :  { %v1509_v52 = vshrl.u32 %v1474_v47, 16  ;;  %v1512_v57 = vshll.u32 %v1474_v47, 16  ;;  %1667 = vmatmul.bf16.vlgmr.msrb.gmra.mxu1 %v3261_v49  ;;  %2004 = vmatpush.bf16.msra.mxu0 %v3762_v29  ;;  %v3769_v49 = vld [vmem:[#allocation6 + $0x408] sm:$0xff] }
 0x2f2   :  { %v1686_v59 = vsel %vm4026_vm11, %v3295_v51, %v1685_v53  ;;  %v1520_v9 = vrot.slane %v1518_v62, 5  ;;  %2101 = vmatpush.bf16.msra.mxu1 %v3778_v35 }
 0x2f3   :  { %v1511_v58 = vrot.slane %v1509_v52, 4  ;;  %v1514_v61 = vrot.slane %v1512_v57, 5  ;;  %v1705_v0 = vunpack.c.l.b16 %v1686_v59  ;;  %1936 = vmatpush.bf16.msrb.mxu3 %v3770_v44 }
 0x2f5   :  { %v1515_v3 = vor.u32 %v1514_v61, %v1511_v58  ;;  %v1706_v4 = vpack.c.b16 %v1705_v0, %v1704_v63  ;;  %2005 = vmatpush.bf16.msra.mxu0 %v3761_v33  ;;  %v1804_v0 = vld [vmem:[#allocation2 + $0x4] sm:$0x1] }
 0x2f6   :  { %2102 = vmatpush.bf16.msra.mxu1 %v3777_v42 }
 0x2f7   :  { %v1516_v7 = vrot.slane %v1515_v3, 4  ;;  %1764 = vmatmul.bf16.vlgmr.msrb.gmra.mxu2 %v1706_v4  ;;  %1937 = vmatpush.bf16.msrb.mxu3 %v3769_v49 }
 0x2f9   :  { %v1521_v10 = vsel %vm4032_vm12, %v1516_v7, %v1520_v9  ;;  %2006 = vmatpush.bf16.msra.mxu0 %v3760_v40 }
 0x2fa   :  { %v1540_v12 = vunpack.c.l.b16 %v1521_v10  ;;  %2103 = vmatpush.bf16.msra.mxu1 %v3776_v46 }
 0x2fb   :  { %1938 = vmatpush.bf16.msrb.mxu3 %v3768_v54 }
 0x2fc   :  { %v1541_v13 = vpack.c.b16 %v1540_v12, %v1539_v11  ;;  %v1807_v11 = vld [vmem:[#allocation2 + $0x8] sm:$0xf]  ;;  %v1810_v12 = vld [vmem:[#allocation2 + $0xc] sm:$0x1] }
 0x2fe   :  { %1599 = vmatmul.bf16.vlgmr.msrb.gmra.mxu0 %v1541_v13 }
 0x36e   :  { %v1668_v34 = vpop.f32.mrf.mxu1 }
 0x376   :  { %v1670_v47 = vpop.f32.mrf.mxu1 }
 0x37a   :  { %v1765_v37 = vpop.f32.mrf.mxu2 }
 0x37b   :  { %v1600_v36 = vpop.f32.mrf.mxu0 }
 0x37c   :  { %v1669_v38 = vadd.f32 %v1668_v34, %v1600_v36 }
 0x37e   :  { %v1770_v43 = vadd.f32 %v1765_v37, %v1669_v38 }
 0x380   :  { %v1774_v45 = vadd.f32 %v3846_v39, %v1770_v43 }
 0x382   :  { %v1776_v19 = vadd.f32 %v1774_v45, %v4095_v28  ;;  %v1767_v52 = vpop.f32.mrf.mxu2 }
 0x383   :  { %v1602_v48 = vpop.f32.mrf.mxu0 }
 0x384   :  { %v4147_v50 = vmax.f32 %v1776_v19, 0.0  ;;  %v1671_v51 = vadd.f32 %v1670_v47, %v1602_v48 }
 0x386   :  { %v1780_v32 = vpack.c.bf16 %v4147_v50, %v4147_v50  ;;  %v1771_v53 = vadd.f32 %v1767_v52, %v1671_v51 }
 0x388   :  { %v1783_v57 = vshrl.u32 %v1780_v32, 16  ;;  %v1775_v58 = vadd.f32 %v3846_v39, %v1771_v53  ;;  %v1786_v60 = vshll.u32 %v1780_v32, 16 }
 0x38a   :  { %v1785_v59 = vrot.slane %v1783_v57, 7  ;;  %v1777_v28 = vadd.f32 %v1775_v58, %v4100_v41  ;;  %v3792_v58 = vld [vmem:[#allocation6 + $0x4b8] sm:$0xff] }
 0x38b   :  { %2337 = vmatpush.bf16.msra.mxu3 %v3792_v58 }
 0x38c   :  { %v1788_v61 = vor.u32 %v1786_v60, %v1785_v59  ;;  %v1789_v62 = vrot.slane %v1785_v59, 4  ;;  %v4152_v63 = vmax.f32 %v1777_v28, 0.0  ;;  %v3791_v59 = vld [vmem:[#allocation6 + $0x4b0] sm:$0xff]  ;;  %v3808_v60 = vld [vmem:[#allocation6 + $0x538] sm:$0xff]  ;;  %v3790_v28 = vld [vmem:[#allocation6 + $0x4a8] sm:$0xff] }
 0x38d   :  { %2434 = vmatpush.bf16.msrb.mxu0 %v3808_v60 }
 0x38e   :  { %v1802_v2 = vsel %vm4008_vm6, %v1788_v61, %v4134_v56  ;;  %v1805_v3 = vsel %vm3989_vm3, %v1789_v62, %v1804_v0  ;;  %v1781_v4 = vpack.c.bf16 %v4152_v63, %v4152_v63  ;;  %v3807_v61 = vld [vmem:[#allocation6 + $0x530] sm:$0xff]  ;;  %v3800_v62 = vld [vmem:[#allocation6 + $0x4f8] sm:$0xff]  ;;  %v3789_v0 = vld [vmem:[#allocation6 + $0x4a0] sm:$0xff] }
 0x38f   :  { %1803 = vst [vmem:[#allocation2] sm:$0xf] %v1802_v2  ;;  %2338 = vmatpush.bf16.msra.mxu3 %v3791_v59  ;;  %2269 = vmatpush.bf16.msra.mxu2 %v3800_v62  ;;  %v3806_v2 = vld [vmem:[#allocation6 + $0x528] sm:$0xff] }
 0x390   :  { %1806 = vst [vmem:[#allocation2 + $0x4] sm:$0x1] %v1805_v3  ;;  %v1791_v5 = vshrl.u32 %v1781_v4, 16  ;;  %v1794_v7 = vshll.u32 %v1781_v4, 16  ;;  %v3799_v3 = vld [vmem:[#allocation6 + $0x4f0] sm:$0xff]  ;;  %v3788_v4 = vld [vmem:[#allocation6 + $0x498] sm:$0xff] }
 0x391   :  { %2435 = vmatpush.bf16.msrb.mxu0 %v3807_v61 }
 0x392   :  { %v1793_v41 = vrot.slane %v1791_v5, 7  ;;  %v3805_v5 = vld [vmem:[#allocation6 + $0x520] sm:$0xff] }
 0x393   :  { %2339 = vmatpush.bf16.msra.mxu3 %v3790_v28  ;;  %2270 = vmatpush.bf16.msra.mxu2 %v3799_v3 }
 0x394   :  { %v1796_v9 = vor.u32 %v1794_v7, %v1793_v41  ;;  %v1797_v10 = vrot.slane %v1793_v41, 4  ;;  %v3798_v41 = vld [vmem:[#allocation6 + $0x4e8] sm:$0xff]  ;;  %v3787_v7 = vld [vmem:[#allocation6 + $0x490] sm:$0xff] }
 0x395   :  { %2436 = vmatpush.bf16.msrb.mxu0 %v3806_v2 }
 0x396   :  { %v1808_v13 = vsel %vm4008_vm6, %v1796_v9, %v1807_v11  ;;  %v1811_v56 = vsel %vm3989_vm3, %v1797_v10, %v1810_v12  ;;  %v4165_v14 = vld [vmem:[#allocation2] sm:$0xf]  ;;  %v3804_v9 = vld [vmem:[#allocation6 + $0x518] sm:$0xff]  ;;  %v3797_v10 = vld [vmem:[#allocation6 + $0x4e0] sm:$0xff] }
 0x397   :  { %1809 = vst [vmem:[#allocation2 + $0x8] sm:$0xf] %v1808_v13  ;;  %v1835_v15 = vshrl.u32 %v4165_v14, 16  ;;  %v1838_v16 = vshll.u32 %v4165_v14, 16  ;;  %v1832_v17 = vld [vmem:[#allocation2 + $0x4] sm:$0x1]  ;;  %2340 = vmatpush.bf16.msra.mxu3 %v3789_v0  ;;  %2271 = vmatpush.bf16.msra.mxu2 %v3798_v41 }
 0x398   :  { %1812 = vst [vmem:[#allocation2 + $0xc] sm:$0x1] %v1811_v56  ;;  %v2013_v20 = vld [vmem:[#allocation2] sm:$0xe]  ;;  %v2021_v24 = vrot.slane %v1832_v17, 5  ;;  %v1844_v1 = vshll.u32 %v1832_v17, 16 }
 0x399   :  { %v1837_v21 = vrot.slane %v1835_v15, 4  ;;  %v1840_v22 = vrot.slane %v1838_v16, 5  ;;  %v3396_v23 = vrot.slane %v2013_v20, 9  ;;  %v3362_v25 = vld [vmem:[#allocation2] sm:$0xf]  ;;  %2437 = vmatpush.bf16.msrb.mxu0 %v3805_v5  ;;  %v3803_v12 = vld [vmem:[#allocation6 + $0x510] sm:$0xff] }
 0x39a   :  { %v1846_v19 = vrot.slane %v1844_v1, 5  ;;  %v3786_v11 = vld [vmem:[#allocation6 + $0x488] sm:$0xff]  ;;  %v3796_v56 = vld [vmem:[#allocation6 + $0x4d8] sm:$0xff]  ;;  %v3785_v15 = vld [vmem:[#allocation6 + $0x480] sm:$0xff] }
 0x39b   :  { %v1841_v31 = vor.u32 %v1840_v22, %v1837_v21  ;;  %v2022_v36 = vsel %vm4026_vm11, %v3396_v23, %v2021_v24  ;;  %2341 = vmatpush.bf16.msra.mxu3 %v3788_v4  ;;  %2272 = vmatpush.bf16.msra.mxu2 %v3797_v10  ;;  %v3802_v20 = vld [vmem:[#allocation6 + $0x508] sm:$0xff]  ;;  %v3847_v22 = vld [vmem:[#allocation8 + $0x5] ss:$0 sm:$0xff]  ;;  %v3795_v23 = vld [vmem:[#allocation6 + $0x4d0] sm:$0xff] }
 0x39c   :  { %v2044_v45 = vunpack.c.l.b16 %v2022_v36  ;;  %v3793_v36 = vld [vmem:[#allocation6 + $0x4c0] sm:$0xff] }
 0x39d   :  { %v1842_v42 = vrot.slane %v1841_v31, 4  ;;  %2438 = vmatpush.bf16.msrb.mxu0 %v3804_v9 }
 0x39e   :  { %v3759_v26 = vld [vmem:[#allocation2 + $0x4] sm:$0xf0] }
 0x39f   :  { %v2014_v27 = vld [vmem:[#allocation2 + $0x8] sm:$0xe]  ;;  %v3363_v55 = vor.u32 %v3759_v26, %v3362_v25  ;;  %v1833_v33 = vld [vmem:[#allocation2 + $0xc] sm:$0x1]  ;;  %v1847_v49 = vsel %vm4032_vm12, %v1842_v42, %v1846_v19  ;;  %2342 = vmatpush.bf16.msra.mxu3 %v3787_v7  ;;  %2273 = vmatpush.bf16.msra.mxu2 %v3796_v56  ;;  %v3801_v25 = vld [vmem:[#allocation6 + $0x500] sm:$0xff] }
 0x3a0   :  { %v1814_v29 = vld [vmem:[#allocation2 + $0x8] sm:$0xf]  ;;  %v3397_v34 = vrot.slane %v2014_v27, 9  ;;  %v2025_v37 = vrot.slane %v1833_v33, 5  ;;  %v1858_v44 = vshll.u32 %v1833_v33, 16  ;;  %v1879_v53 = vunpack.c.l.b16 %v1847_v49  ;;  %v3794_v27 = vld [vmem:[#allocation6 + $0x4c8] sm:$0xff] }
 0x3a1   :  { %v1849_v35 = vshrl.u32 %v1814_v29, 16  ;;  %v1852_v38 = vshll.u32 %v1814_v29, 16  ;;  %2007 = vmatmul.bf16.vlgmr.msra.gmra.mxu0 %v3363_v55 }
 0x3a2   :  { %v2026_v40 = vsel %vm4026_vm11, %v3397_v34, %v2025_v37  ;;  %v1860_v52 = vrot.slane %v1858_v44, 5  ;;  %2439 = vmatpush.bf16.msrb.mxu0 %v3803_v12 }
 0x3a3   :  { %v1851_v39 = vrot.slane %v1849_v35, 4  ;;  %v1854_v43 = vrot.slane %v1852_v38, 5  ;;  %v2045_v46 = vunpack.c.l.b16 %v2026_v40  ;;  %2343 = vmatpush.bf16.msra.mxu3 %v3786_v11  ;;  %2274 = vmatpush.bf16.msra.mxu2 %v3795_v23 }
 0x3a5   :  { %v1855_v47 = vor.u32 %v1854_v43, %v1851_v39  ;;  %v2046_v48 = vpack.c.b16 %v2045_v46, %v2044_v45  ;;  %v2142_v45 = vld [vmem:[#allocation2 + $0x4] sm:$0x1] }
 0x3a6   :  { %2440 = vmatpush.bf16.msrb.mxu0 %v3802_v20 }
 0x3a7   :  { %v1856_v51 = vrot.slane %v1855_v47, 4  ;;  %2104 = vmatmul.bf16.vlgmr.msra.gmra.mxu1 %v2046_v48  ;;  %2344 = vmatpush.bf16.msra.mxu3 %v3785_v15 }
 0x3a8   :  { %2275 = vmatpush.bf16.msra.mxu2 %v3794_v27 }
 0x3a9   :  { %v1861_v32 = vsel %vm4032_vm12, %v1856_v51, %v1860_v52 }
 0x3aa   :  { %v1880_v54 = vunpack.c.l.b16 %v1861_v32  ;;  %2441 = vmatpush.bf16.msrb.mxu0 %v3801_v25 }
 0x3ac   :  { %v1881_v57 = vpack.c.b16 %v1880_v54, %v1879_v53  ;;  %2276 = vmatpush.bf16.msra.mxu2 %v3793_v36  ;;  %v2145_v53 = vld [vmem:[#allocation2 + $0x8] sm:$0xf]  ;;  %v2148_v54 = vld [vmem:[#allocation2 + $0xc] sm:$0x1] }
 0x3ae   :  { %1939 = vmatmul.bf16.vlgmr.msrb.gmra.mxu3 %v1881_v57 }
 0x41e   :  { %v2008_v13 = vpop.f32.mrf.mxu0 }
 0x424   :  { %v2105_v16 = vpop.f32.mrf.mxu1 }
 0x426   :  { %v2010_v31 = vpop.f32.mrf.mxu0 }
 0x42c   :  { %v2107_v35 = vpop.f32.mrf.mxu1 }
 0x431   :  { %v1940_v17 = vpop.f32.mrf.mxu3 }
 0x432   :  { %v2009_v21 = vadd.f32 %v2008_v13, %v1940_v17 }
 0x434   :  { %v2110_v24 = vadd.f32 %v2105_v16, %v2009_v21 }
 0x436   :  { %v2114_v26 = vadd.f32 %v3847_v22, %v2110_v24 }
 0x438   :  { %v2116_v29 = vmax.f32 %v2114_v26, 0.0 }
 0x439   :  { %v1942_v55 = vpop.f32.mrf.mxu3 }
 0x43a   :  { %v2118_v33 = vpack.c.bf16 %v2116_v29, %v2116_v29  ;;  %v2011_v34 = vadd.f32 %v2010_v31, %v1942_v55 }
 0x43c   :  { %v2121_v37 = vshrl.u32 %v2118_v33, 16  ;;  %v2111_v1 = vadd.f32 %v2107_v35, %v2011_v34  ;;  %v2124_v39 = vshll.u32 %v2118_v33, 16 }
 0x43e   :  { %v2123_v38 = vrot.slane %v2121_v37, 7  ;;  %v2115_v40 = vadd.f32 %v3847_v22, %v2111_v1 }
 0x440   :  { %v2126_v42 = vor.u32 %v2124_v39, %v2123_v38  ;;  %v2127_v43 = vrot.slane %v2123_v38, 4  ;;  %v2117_v44 = vmax.f32 %v2115_v40, 0.0  ;;  %v3817_v38 = vld [vmem:[#allocation6 + $0x578] sm:$0xff]  ;;  %v3816_v39 = vld [vmem:[#allocation6 + $0x570] sm:$0xff] }
 0x441   :  { %2677 = vmatpush.bf16.msrb.mxu2 %v3817_v38  ;;  %v3833_v40 = vld [vmem:[#allocation6 + $0x5f8] sm:$0xff] }
 0x442   :  { %v2140_v46 = vsel %vm4008_vm6, %v2126_v42, %v4165_v14  ;;  %v2143_v19 = vsel %vm3989_vm3, %v2127_v43, %v2142_v45  ;;  %v2119_v47 = vpack.c.bf16 %v2117_v44, %v2117_v44  ;;  %2774 = vmatpush.bf16.msrb.mxu3 %v3833_v40  ;;  %v3815_v42 = vld [vmem:[#allocation6 + $0x568] sm:$0xff]  ;;  %v3832_v43 = vld [vmem:[#allocation6 + $0x5f0] sm:$0xff]  ;;  %v3825_v44 = vld [vmem:[#allocation6 + $0x5b8] sm:$0xff] }
 0x443   :  { %2141 = vst [vmem:[#allocation2] sm:$0xf] %v2140_v46  ;;  %v3814_v45 = vld [vmem:[#allocation6 + $0x560] sm:$0xff]  ;;  %2609 = vmatpush.bf16.msrb.mxu1 %v3825_v44  ;;  %v3831_v46 = vld [vmem:[#allocation6 + $0x5e8] sm:$0xff] }
 0x444   :  { %2144 = vst [vmem:[#allocation2 + $0x4] sm:$0x1] %v2143_v19  ;;  %v2129_v48 = vshrl.u32 %v2119_v47, 16  ;;  %v2132_v51 = vshll.u32 %v2119_v47, 16  ;;  %v3824_v19 = vld [vmem:[#allocation6 + $0x5b0] sm:$0xff]  ;;  %v3813_v47 = vld [vmem:[#allocation6 + $0x558] sm:$0xff] }
 0x445   :  { %2678 = vmatpush.bf16.msrb.mxu2 %v3816_v39 }
 0x446   :  { %v2131_v49 = vrot.slane %v2129_v48, 7  ;;  %2775 = vmatpush.bf16.msrb.mxu3 %v3832_v43  ;;  %v3830_v48 = vld [vmem:[#allocation6 + $0x5e0] sm:$0xff] }
 0x447   :  { %2610 = vmatpush.bf16.msrb.mxu1 %v3824_v19 }
 0x448   :  { %v2134_v52 = vor.u32 %v2132_v51, %v2131_v49  ;;  %v2135_v32 = vrot.slane %v2131_v49, 4  ;;  %v3823_v49 = vld [vmem:[#allocation6 + $0x5a8] sm:$0xff]  ;;  %v3812_v51 = vld [vmem:[#allocation6 + $0x550] sm:$0xff] }
 0x449   :  { %2679 = vmatpush.bf16.msrb.mxu2 %v3815_v42 }
 0x44a   :  { %v2146_v57 = vsel %vm4008_vm6, %v2134_v52, %v2145_v53  ;;  %v2149_v58 = vsel %vm3989_vm3, %v2135_v32, %v2148_v54  ;;  %v4186_v14 = vld [vmem:[#allocation2] sm:$0xf]  ;;  %2776 = vmatpush.bf16.msrb.mxu3 %v3831_v46  ;;  %v3829_v52 = vld [vmem:[#allocation6 + $0x5d8] sm:$0xff]  ;;  %v3822_v32 = vld [vmem:[#allocation6 + $0x5a0] sm:$0xff] }
 0x44b   :  { %2147 = vst [vmem:[#allocation2 + $0x8] sm:$0xf] %v2146_v57  ;;  %v2173_v59 = vshrl.u32 %v4186_v14, 16  ;;  %v2176_v60 = vshll.u32 %v4186_v14, 16  ;;  %v2170_v28 = vld [vmem:[#allocation2 + $0x4] sm:$0x1]  ;;  %2611 = vmatpush.bf16.msrb.mxu1 %v3823_v49 }
 0x44c   :  { %2150 = vst [vmem:[#allocation2 + $0xc] sm:$0x1] %v2149_v58  ;;  %v2351_v61 = vld [vmem:[#allocation2] sm:$0xe]  ;;  %v2359_v3 = vrot.slane %v2170_v28, 5  ;;  %v2182_v16 = vshll.u32 %v2170_v28, 16 }
 0x44d   :  { %v2175_v62 = vrot.slane %v2173_v59, 4  ;;  %v2178_v0 = vrot.slane %v2176_v60, 5  ;;  %v3498_v2 = vrot.slane %v2351_v61, 9  ;;  %v3464_v4 = vld [vmem:[#allocation2] sm:$0xf]  ;;  %2680 = vmatpush.bf16.msrb.mxu2 %v3814_v45  ;;  %v3828_v57 = vld [vmem:[#allocation6 + $0x5d0] sm:$0xff] }
 0x44e   :  { %v2184_v27 = vrot.slane %v2182_v16, 5  ;;  %2777 = vmatpush.bf16.msrb.mxu3 %v3830_v48  ;;  %v3811_v53 = vld [vmem:[#allocation6 + $0x548] sm:$0xff]  ;;  %v3821_v60 = vld [vmem:[#allocation6 + $0x598] sm:$0xff]  ;;  %v3848_v61 = vld [vmem:[#allocation8 + $0x6] ss:$0 sm:$0xff] }
 0x44f   :  { %v2179_v9 = vor.u32 %v2178_v0, %v2175_v62  ;;  %v2360_v56 = vsel %vm4026_vm11, %v3498_v2, %v2359_v3  ;;  %2612 = vmatpush.bf16.msrb.mxu1 %v3822_v32  ;;  %v3810_v62 = vld [vmem:[#allocation6 + $0x540] sm:$0xff]  ;;  %v3827_v0 = vld [vmem:[#allocation6 + $0x5c8] sm:$0xff]  ;;  %v3820_v3 = vld [vmem:[#allocation6 + $0x590] sm:$0xff] }
 0x450   :  { %v2382_v25 = vunpack.c.l.b16 %v2360_v56  ;;  %v3818_v16 = vld [vmem:[#allocation6 + $0x580] sm:$0xff] }
 0x451   :  { %v2180_v22 = vrot.slane %v2179_v9, 4  ;;  %2681 = vmatpush.bf16.msrb.mxu2 %v3813_v47 }
 0x452   :  { %v3784_v5 = vld [vmem:[#allocation2 + $0x4] sm:$0xf0]  ;;  %2778 = vmatpush.bf16.msrb.mxu3 %v3829_v52 }
 0x453   :  { %v2352_v41 = vld [vmem:[#allocation2 + $0x8] sm:$0xe]  ;;  %v3465_v10 = vor.u32 %v3784_v5, %v3464_v4  ;;  %v2171_v11 = vld [vmem:[#allocation2 + $0xc] sm:$0x1]  ;;  %v2185_v55 = vsel %vm4032_vm12, %v2180_v22, %v2184_v27  ;;  %2613 = vmatpush.bf16.msrb.mxu1 %v3821_v60  ;;  %v3826_v5 = vld [vmem:[#allocation6 + $0x5c0] sm:$0xff] }
 0x454   :  { %v2152_v7 = vld [vmem:[#allocation2 + $0x8] sm:$0xf]  ;;  %v3499_v12 = vrot.slane %v2352_v41, 9  ;;  %v2363_v15 = vrot.slane %v2171_v11, 5  ;;  %v2196_v24 = vshll.u32 %v2171_v11, 16  ;;  %v2217_v36 = vunpack.c.l.b16 %v2185_v55 }
 0x455   :  { %v2187_v13 = vshrl.u32 %v2152_v7, 16  ;;  %v2190_v17 = vshll.u32 %v2152_v7, 16  ;;  %2345 = vmatmul.bf16.vlgmr.msra.gmra.mxu3 %v3465_v10  ;;  %2682 = vmatpush.bf16.msrb.mxu2 %v3812_v51  ;;  %v3819_v10 = vld [vmem:[#allocation6 + $0x588] sm:$0xff] }
 0x456   :  { %v2364_v21 = vsel %vm4026_vm11, %v3499_v12, %v2363_v15  ;;  %v2198_v34 = vrot.slane %v2196_v24, 5  ;;  %2779 = vmatpush.bf16.msrb.mxu3 %v3828_v57 }
 0x457   :  { %v2189_v20 = vrot.slane %v2187_v13, 4  ;;  %v2192_v23 = vrot.slane %v2190_v17, 5  ;;  %v2383_v26 = vunpack.c.l.b16 %v2364_v21  ;;  %2614 = vmatpush.bf16.msrb.mxu1 %v3820_v3 }
 0x459   :  { %v2193_v29 = vor.u32 %v2192_v23, %v2189_v20  ;;  %v2384_v31 = vpack.c.b16 %v2383_v26, %v2382_v25  ;;  %2683 = vmatpush.bf16.msrb.mxu2 %v3811_v53  ;;  %v2482_v26 = vld [vmem:[#allocation2 + $0x4] sm:$0x1] }
 0x45a   :  { %2780 = vmatpush.bf16.msrb.mxu3 %v3827_v0 }
 0x45b   :  { %v2194_v33 = vrot.slane %v2193_v29, 4  ;;  %2442 = vmatmul.bf16.vlgmr.msrb.gmra.mxu0 %v2384_v31  ;;  %2615 = vmatpush.bf16.msrb.mxu1 %v3819_v10 }
 0x45d   :  { %v2199_v35 = vsel %vm4032_vm12, %v2194_v33, %v2198_v34  ;;  %2684 = vmatpush.bf16.msrb.mxu2 %v3810_v62 }
 0x45e   :  { %v2218_v37 = vunpack.c.l.b16 %v2199_v35  ;;  %2781 = vmatpush.bf16.msrb.mxu3 %v3826_v5 }
 0x45f   :  { %2616 = vmatpush.bf16.msrb.mxu1 %v3818_v16 }
 0x460   :  { %v2219_v1 = vpack.c.b16 %v2218_v37, %v2217_v36  ;;  %v2485_v36 = vld [vmem:[#allocation2 + $0x8] sm:$0xf]  ;;  %v2488_v37 = vld [vmem:[#allocation2 + $0xc] sm:$0x1] }
 0x462   :  { %2277 = vmatmul.bf16.vlgmr.msra.gmra.mxu2 %v2219_v1 }
 0x4d8   :  { %v2346_v54 = vpop.f32.mrf.mxu3  ;;  %v2443_v58 = vpop.f32.mrf.mxu0 }
 0x4e0   :  { %v2348_v7 = vpop.f32.mrf.mxu3  ;;  %v2445_v13 = vpop.f32.mrf.mxu0 }
 0x4e5   :  { %v2278_v59 = vpop.f32.mrf.mxu2 }
 0x4e6   :  { %v2347_v28 = vadd.f32 %v2346_v54, %v2278_v59 }
 0x4e8   :  { %v2448_v2 = vadd.f32 %v2443_v58, %v2347_v28 }
 0x4ea   :  { %v2452_v4 = vadd.f32 %v3848_v61, %v2448_v2 }
 0x4ec   :  { %v2454_v41 = vadd.f32 %v2452_v4, %v4147_v50 }
 0x4ed   :  { %v2280_v9 = vpop.f32.mrf.mxu2 }
 0x4ee   :  { %v2456_v11 = vmax.f32 %v2454_v41, 0.0  ;;  %v2349_v12 = vadd.f32 %v2348_v7, %v2280_v9 }
 0x4f0   :  { %v2458_v56 = vpack.c.bf16 %v2456_v11, %v2456_v11  ;;  %v2449_v15 = vadd.f32 %v2445_v13, %v2349_v12 }
 0x4f2   :  { %v2461_v17 = vshrl.u32 %v2458_v56, 16  ;;  %v2453_v20 = vadd.f32 %v3848_v61, %v2449_v15  ;;  %v2464_v22 = vshll.u32 %v2458_v56, 16 }
 0x4f4   :  { %v2463_v21 = vrot.slane %v2461_v17, 7  ;;  %v2455_v23 = vadd.f32 %v2453_v20, %v4152_v63  ;;  %v3849_v20 = vld [vmem:[#allocation8 + $0x7] ss:$0 sm:$0xff] }
 0x4f6   :  { %v2466_v50 = vor.u32 %v2464_v22, %v2463_v21  ;;  %v2467_v24 = vrot.slane %v2463_v21, 4  ;;  %v2457_v25 = vmax.f32 %v2455_v23, 0.0 }
 0x4f8   :  { %v2480_v27 = vsel %vm4008_vm6, %v2466_v50, %v4186_v14  ;;  %v2483_v29 = vsel %vm3989_vm3, %v2467_v24, %v2482_v26  ;;  %v2459_v31 = vpack.c.bf16 %v2457_v25, %v2457_v25 }
 0x4f9   :  { %2481 = vst [vmem:[#allocation2] sm:$0xf] %v2480_v27 }
 0x4fa   :  { %2484 = vst [vmem:[#allocation2 + $0x4] sm:$0x1] %v2483_v29  ;;  %v2469_v55 = vshrl.u32 %v2459_v31, 16  ;;  %v2472_v34 = vshll.u32 %v2459_v31, 16 }
 0x4fc   :  { %v2471_v33 = vrot.slane %v2469_v55, 7 }
 0x4fe   :  { %v2474_v35 = vor.u32 %v2472_v34, %v2471_v33  ;;  %v2475_v63 = vrot.slane %v2471_v33, 4 }
 0x500   :  { %v2486_v1 = vsel %vm4008_vm6, %v2474_v35, %v2485_v36  ;;  %v2489_v38 = vsel %vm3989_vm3, %v2475_v63, %v2488_v37  ;;  %v2491_v14 = vld [vmem:[#allocation2] sm:$0xf] }
 0x501   :  { %2487 = vst [vmem:[#allocation2 + $0x8] sm:$0xf] %v2486_v1  ;;  %v2513_v39 = vshrl.u32 %v2491_v14, 16  ;;  %v2516_v40 = vshll.u32 %v2491_v14, 16  ;;  %v2510_v42 = vld [vmem:[#allocation2 + $0x4] sm:$0x1] }
 0x502   :  { %2490 = vst [vmem:[#allocation2 + $0xc] sm:$0x1] %v2489_v38  ;;  %v2691_v43 = vld [vmem:[#allocation2] sm:$0xe]  ;;  %v2699_v19 = vrot.slane %v2510_v42, 5  ;;  %v2522_v58 = vshll.u32 %v2510_v42, 16 }
 0x503   :  { %v2515_v44 = vrot.slane %v2513_v39, 4  ;;  %v2518_v45 = vrot.slane %v2516_v40, 5  ;;  %v3600_v46 = vrot.slane %v2691_v43, 9  ;;  %v3566_v47 = vld [vmem:[#allocation2] sm:$0xf] }
 0x504   :  { %v2524_v4 = vrot.slane %v2522_v58, 5 }
 0x505   :  { %v2519_v30 = vor.u32 %v2518_v45, %v2515_v44  ;;  %v2700_v54 = vsel %vm4026_vm11, %v3600_v46, %v2699_v19 }
 0x506   :  { %v2722_v2 = vunpack.c.l.b16 %v2700_v54 }
 0x507   :  { %v2520_v61 = vrot.slane %v2519_v30, 4 }
 0x508   :  { %v3809_v48 = vld [vmem:[#allocation2 + $0x4] sm:$0xf0] }
 0x509   :  { %v2692_v49 = vld [vmem:[#allocation2 + $0x8] sm:$0xe]  ;;  %v3567_v52 = vor.u32 %v3809_v48, %v3566_v47  ;;  %v2511_v32 = vld [vmem:[#allocation2 + $0xc] sm:$0x1]  ;;  %v2525_v7 = vsel %vm4032_vm12, %v2520_v61, %v2524_v4 }
 0x50a   :  { %v2492_v51 = vld [vmem:[#allocation2 + $0x8] sm:$0xf]  ;;  %v3601_v6 = vrot.slane %v2692_v49, 9  ;;  %v2703_v57 = vrot.slane %v2511_v32, 5  ;;  %v2536_v0 = vshll.u32 %v2511_v32, 16  ;;  %v2557_v12 = vunpack.c.l.b16 %v2525_v7 }
 0x50b   :  { %v2527_v53 = vshrl.u32 %v2492_v51, 16  ;;  %v2530_v59 = vshll.u32 %v2492_v51, 16  ;;  %2685 = vmatmul.bf16.vlgmr.msrb.gmra.mxu2 %v3567_v52 }
 0x50c   :  { %v2704_v28 = vsel %vm4026_vm11, %v3601_v6, %v2703_v57  ;;  %v2538_v10 = vrot.slane %v2536_v0, 5 }
 0x50d   :  { %v2529_v60 = vrot.slane %v2527_v53, 4  ;;  %v2532_v62 = vrot.slane %v2530_v59, 5  ;;  %v2723_v3 = vunpack.c.l.b16 %v2704_v28 }
 0x50f   :  { %v2533_v5 = vor.u32 %v2532_v62, %v2529_v60  ;;  %v2724_v41 = vpack.c.b16 %v2723_v3, %v2722_v2 }
 0x511   :  { %v2534_v9 = vrot.slane %v2533_v5, 4  ;;  %2782 = vmatmul.bf16.vlgmr.msrb.gmra.mxu3 %v2724_v41 }
 0x513   :  { %v2539_v11 = vsel %vm4032_vm12, %v2534_v9, %v2538_v10 }
 0x514   :  { %v2558_v8 = vunpack.c.l.b16 %v2539_v11 }
 0x516   :  { %v2559_v13 = vpack.c.b16 %v2558_v8, %v2557_v12 }
 0x518   :  { %2617 = vmatmul.bf16.vlgmr.msrb.gmra.mxu1 %v2559_v13 }
 0x58e   :  { %v2686_v56 = vpop.f32.mrf.mxu2 }
 0x594   :  { %v2783_v16 = vpop.f32.mrf.mxu3 }
 0x595   :  { %v2618_v15 = vpop.f32.mrf.mxu1 }
 0x596   :  { %v2687_v17 = vadd.f32 %v2686_v56, %v2618_v15  ;;  %v2688_v50 = vpop.f32.mrf.mxu2 }
 0x598   :  { %v2788_v21 = vadd.f32 %v2783_v16, %v2687_v17 }
 0x59a   :  { %v2792_v22 = vadd.f32 %v3849_v20, %v2788_v21 }
 0x59c   :  { %v2794_v23 = vmax.f32 %v2792_v22, 0.0  ;;  %v2785_v26 = vpop.f32.mrf.mxu3 }
 0x59d   :  { %v2620_v24 = vpop.f32.mrf.mxu1 }
 0x59e   :  { %2796 = vst [vmem:[#allocation9] sm:$0xff] %v2794_v23  ;;  %v2689_v25 = vadd.f32 %v2688_v50, %v2620_v24 }
 0x5a0   :  { %v2789_v27 = vadd.f32 %v2785_v26, %v2689_v25 }
 0x5a2   :  { %v2793_v18 = vadd.f32 %v3849_v20, %v2789_v27 }
 0x5a4   :  { %v2795_v29 = vmax.f32 %v2793_v18, 0.0 }
 0x5a6   :  { %2797 = vst [vmem:[#allocation9 + $0x8] sm:$0xff] %v2795_v29 }
 0x5a7   :  { %2810 = dma.vmem_to_hbm [thread:$0]  %s2803_s2, 256, %s2805_s30, [#allocation5], %s3958_s4, %s3958_s4, %s3959_s5  }
 0x5a8   :  { %3950 = dma.done.wait [#allocation5], 256  }
 0x5a9   :  { %3951 = vsyncadd [#allocation5], 4294967040 }
 0x5aa   :  { %2815 = vsyncpa [#allocation4], 1 }
 0x5ab   :  { %2816 = vsyncpa [#allocation7], 1 }
 0x5ac   :  { %2817 = vsyncpa [#allocation5], 1 }

</bundles_post_ra>
